<compile_context>
chip_gen: v5e
topology: v5e:2x2
jax: 0.10.0
libtpu: 0.0.40
codegen_flags: <defaults>
</compile_context>

<pallas_src>
import functools

import jax
import jax.numpy as jnp
from jax.experimental import pallas as pl
from jax.experimental.pallas import tpu as pltpu


# ----------------------------------------------------------------------------
# Kernel
# ----------------------------------------------------------------------------
def _oa_kernel(x_ref, w1m_ref, b1_ref, wq1_ref, bq1_ref, wq2t_ref, bq2_ref,
               wom_ref, bo_ref, out_ref, *, H, W, C):
    HW = H * W
    PADF = 2 * W + 2                        # covers the largest flat shift (5x5)

    x = x_ref[0]                            # (C, HW) channel-major, lane-dense

    # Column-validity masks per horizontal offset.  Row wrap-around is handled
    # by the zero flat padding below; only the w-boundary needs masking.
    col = jax.lax.broadcasted_iota(jnp.int32, (1, HW), 1) % W
    masks = {dw: ((col + dw >= 0) & (col + dw < W)).astype(jnp.float32)
             for dw in range(-2, 3)}

    def flat_pad(slab):                     # (R, HW) -> (R, HW + 2*PADF), zero pad
        z = jnp.zeros((slab.shape[0], PADF), jnp.float32)
        return jnp.concatenate([z, slab, z], axis=1)

    def shifted(slab_pad, dh, dw):          # zero-padded 2-D shift -> (R, HW)
        off = PADF + dh * W + dw            # static offset (dh, dw Python ints)
        sl = slab_pad[:, off:off + HW]
        return sl if dw == 0 else sl * masks[dw]

    taps3 = [(dh, dw) for dh in (-1, 0, 1) for dw in (-1, 0, 1)]

    # ---- conv_in_1: 3x3, pad=1, bias  ->  one (C, 9C) x (9C, HW) matmul ----
    xpf = flat_pad(x)
    p1 = jnp.concatenate([shifted(xpf, dh, dw) for dh, dw in taps3], axis=0)
    c1 = jnp.dot(w1m_ref[...], p1,
                 preferred_element_type=jnp.float32) + b1_ref[...]      # (C, HW)

    # ---- conv_in_2 / conv_in_3: masked all-ones 5x5, pad=2, no bias --------
    # Weights are identical across in/out channels, so each output channel is
    # the same box-masked sum of the channel-sum row (pure VPU/XLU work).
    s = jnp.sum(x, axis=0, keepdims=True)                               # (1, HW)
    spf = flat_pad(s)
    plus_taps = [(0, 0), (0, -1), (0, 1), (0, -2), (0, 2),
                 (-1, 0), (1, 0), (-2, 0), (2, 0)]                       # u==2 or v==2
    x_taps = [(0, 0), (-1, -1), (-1, 1), (1, -1), (1, 1),
              (-2, -2), (-2, 2), (2, -2), (2, 2)]                        # diagonal X
    c2row = shifted(spf, *plus_taps[0])
    for t in plus_taps[1:]:
        c2row = c2row + shifted(spf, *t)
    c3row = shifted(spf, *x_taps[0])
    for t in x_taps[1:]:
        c3row = c3row + shifted(spf, *t)
    c2 = jnp.broadcast_to(c2row, (C, HW))
    c3 = jnp.broadcast_to(c3row, (C, HW))

    x_cat = jnp.concatenate([c1, c2, c3], axis=0)                        # (3C, HW)

    # ---- adaptive_avg_pool + 1x1-conv MLP + sigmoid (VPU/XLU, no MXU) ------
    pooled = jnp.mean(x_cat, axis=1, keepdims=True)                      # (3C, 1)
    h1 = jnp.maximum(
        jnp.sum(pooled * wq1_ref[...], axis=0, keepdims=True)
        + bq1_ref[...], 0.0)                                             # (1, 3C)
    attn = jax.nn.sigmoid(
        jnp.sum(wq2t_ref[...] * h1, axis=1, keepdims=True)
        + bq2_ref[...])                                                  # (3C, 1)

    # ---- channel attention + ReLU ------------------------------------------
    x_cat_attn = jnp.maximum(x_cat * attn, 0.0)                          # (3C, HW)

    # ---- conv_out: 3x3, pad=1 -> one (C, 27C) x (27C, HW) matmul -----------
    apf = flat_pad(x_cat_attn)
    po = jnp.concatenate([shifted(apf, dh, dw) for dh, dw in taps3], axis=0)
    x_out = jnp.dot(wom_ref[...], po,
                    preferred_element_type=jnp.float32) + bo_ref[...]    # (C, HW)

    out_ref[0] = x + x_out                                               # residual


# ----------------------------------------------------------------------------
# Wrapper
# ----------------------------------------------------------------------------
def _full_spec(shape):
    n = len(shape)
    return pl.BlockSpec(shape, lambda b, n=n: (0,) * n)


def orientation_attention(x_nchw, p):
    """x_nchw: (N, C, H, W) float32 (PyTorch layout); p: parameter dict."""
    N, C, H, W = x_nchw.shape
    HW = H * W
    C3 = 3 * C

    # Lane-dense slabs: free reshape, flattened spatial on the lane axis.
    x_flat = x_nchw.reshape(N, C, HW)

    # Repack conv weights into (Cout, K*K*Cin) matmul matrices (tiny, one-off).
    w1m = jnp.transpose(p["w1"].reshape(9 * C, C))        # (C, 9C)
    wom = jnp.transpose(p["wo"].reshape(9 * C3, C))       # (C, 27C)
    b1c = p["b1"].reshape(C, 1)
    boc = p["bo"].reshape(C, 1)
    bq1r = p["bq1"].reshape(1, C3)
    bq2c = p["bq2"].reshape(C3, 1)
    wq2t = jnp.transpose(p["wq2"])                        # (out, in)

    kernel = functools.partial(_oa_kernel, H=H, W=W, C=C)

    in_specs = [
        pl.BlockSpec((1, C, HW), lambda b: (b, 0, 0)),    # x (lane-dense)
        _full_spec((C, 9 * C)),     # conv_in_1 weight matrix
        _full_spec((C, 1)),         # conv_in_1 bias (column)
        _full_spec((C3, C3)),       # conv_weight_1 (in, out)
        _full_spec((1, C3)),        # conv_weight_1 bias (row)
        _full_spec((C3, C3)),       # conv_weight_2^T (out, in)
        _full_spec((C3, 1)),        # conv_weight_2 bias (column)
        _full_spec((C, 9 * C3)),    # conv_out weight matrix
        _full_spec((C, 1)),         # conv_out bias (column)
    ]

    out_flat = pl.pallas_call(
        kernel,
        out_shape=jax.ShapeDtypeStruct((N, C, HW), jnp.float32),
        grid=(N,),                  # batch axis parallel (feeds both v7x TCs)
        in_specs=in_specs,
        out_specs=pl.BlockSpec((1, C, HW), lambda b: (b, 0, 0)),
        compiler_params=pltpu.CompilerParams(
            dimension_semantics=("parallel",)),
    )(x_flat, w1m, b1c, p["wq1"], bq1r, wq2t, bq2c, wom, boc)

    return out_flat.reshape(N, C, H, W)


# ----------------------------------------------------------------------------
# Parameter construction (deterministic, synthetic)
# ----------------------------------------------------------------------------
_IDX_U_2 = [0, 0, 0, 0, 1, 1, 1, 1, 3, 3, 3, 3, 4, 4, 4, 4]
_IDX_V_2 = [0, 1, 3, 4, 0, 1, 3, 4, 0, 1, 3, 4, 0, 1, 3, 4]
_IDX_U_3 = [0, 0, 0, 1, 1, 1, 2, 2, 2, 2, 3, 3, 3, 4, 4, 4]
_IDX_V_3 = [1, 2, 3, 0, 2, 4, 0, 1, 3, 4, 0, 2, 4, 1, 2, 3]


def _dilated_weight(dim, idx_u, idx_v):
    # PyTorch Dilated_Conv2d: weight = ones(dim, dim, 5, 5) with masked taps = 0
    w = jnp.ones((dim, dim, 5, 5), jnp.float32)                 # OIHW
    w = w.at[:, :, jnp.array(idx_u), jnp.array(idx_v)].set(0.0)
    return jnp.transpose(w, (2, 3, 1, 0))                       # -> HWIO


def init_params(key, dim):
    C3 = 3 * dim
    ks = jax.random.split(key, 8)

    def rnd(k, shape, scale):
        return jax.random.normal(k, shape, jnp.float32) * scale

    return dict(
        w1=rnd(ks[0], (3, 3, dim, dim), 0.10),   # conv_in_1 (HWIO)
        b1=rnd(ks[1], (dim,), 0.10),
        w2=_dilated_weight(dim, _IDX_U_2, _IDX_V_2),   # reference only
        w3=_dilated_weight(dim, _IDX_U_3, _IDX_V_3),   # reference only
        wq1=rnd(ks[2], (C3, C3), 0.10),          # conv_weight_1 (in, out)
        bq1=rnd(ks[3], (C3,), 0.10),
        wq2=rnd(ks[4], (C3, C3), 0.10),          # conv_weight_2 (in, out)
        bq2=rnd(ks[5], (C3,), 0.10),
        wo=rnd(ks[6], (3, 3, C3, dim), 0.05),    # conv_out (HWIO)
        bo=rnd(ks[7], (dim,), 0.10),
    )


# ----------------------------------------------------------------------------
# Pure-JAX reference (for correctness check), NCHW like the PyTorch module
# ----------------------------------------------------------------------------
def ref_forward(x, p):
    def conv(inp, w, pad):
        return jax.lax.conv_general_dilated(
            inp, w, (1, 1), [(pad, pad), (pad, pad)],
            dimension_numbers=("NCHW", "HWIO", "NCHW"))

    c1 = conv(x, p["w1"], 1) + p["b1"].reshape(1, -1, 1, 1)
    c2 = conv(x, p["w2"], 2)
    c3 = conv(x, p["w3"], 2)
    cat = jnp.concatenate([c1, c2, c3], axis=1)
    pooled = jnp.mean(cat, axis=(2, 3))                          # (N, 3C)
    h = jnp.maximum(pooled @ p["wq1"] + p["bq1"], 0.0)
    attn = jax.nn.sigmoid(h @ p["wq2"] + p["bq2"])               # (N, 3C)
    cattn = jnp.maximum(cat * attn[:, :, None, None], 0.0)
    xout = conv(cattn, p["wo"], 1) + p["bo"].reshape(1, -1, 1, 1)
    return x + xout


# ----------------------------------------------------------------------------
if __name__ == "__main__":
    key = jax.random.PRNGKey(0)
    N, C, H, W = 2, 4, 16, 16
    k_x, k_p = jax.random.split(key)

    # PyTorch-style NCHW input; the wrapper only reshapes (no transpose/pad).
    x = jax.random.normal(k_x, (N, C, H, W), jnp.float32)
    params = init_params(k_p, C)

    out = orientation_attention(x, params)
    out = jax.block_until_ready(out)

    ref = ref_forward(x, params)
    assert out.shape == (N, C, H, W)
    assert jnp.allclose(out, ref, atol=2e-3, rtol=2e-3), "mismatch vs reference"

    print("KERNEL_OK")
</pallas_src>

<mosaic_0001>
module attributes {stable_mosaic.version = 11 : i64} {
  func.func @_oa_kernel(%arg0: i32, %arg1: memref<1x4x256xf32, #tpu.memory_space<vmem>>, %arg2: memref<4x36xf32, #tpu.memory_space<vmem>>, %arg3: memref<4x1xf32, #tpu.memory_space<vmem>>, %arg4: memref<12x12xf32, #tpu.memory_space<vmem>>, %arg5: memref<1x12xf32, #tpu.memory_space<vmem>>, %arg6: memref<12x12xf32, #tpu.memory_space<vmem>>, %arg7: memref<12x1xf32, #tpu.memory_space<vmem>>, %arg8: memref<4x108xf32, #tpu.memory_space<vmem>>, %arg9: memref<4x1xf32, #tpu.memory_space<vmem>>, %arg10: memref<1x4x256xf32, #tpu.memory_space<vmem>>) attributes {dimension_semantics = [#tpu.dimension_semantics<parallel>], iteration_bounds = array<i64: 2>, scalar_prefetch = 0 : i64, scratch_operands = 0 : i64, tpu.core_type = #tpu.core_type<tc>, window_params = [{transform_indices = @transform_0, window_bounds = array<i64: 1, 4, 256>}, {pipeline_mode = #tpu.pipeline_mode<synchronous>, transform_indices = @transform_1, window_bounds = array<i64: 4, 36>}, {pipeline_mode = #tpu.pipeline_mode<synchronous>, transform_indices = @transform_2, window_bounds = array<i64: 4, 1>}, {pipeline_mode = #tpu.pipeline_mode<synchronous>, transform_indices = @transform_3, window_bounds = array<i64: 12, 12>}, {pipeline_mode = #tpu.pipeline_mode<synchronous>, transform_indices = @transform_4, window_bounds = array<i64: 1, 12>}, {pipeline_mode = #tpu.pipeline_mode<synchronous>, transform_indices = @transform_5, window_bounds = array<i64: 12, 12>}, {pipeline_mode = #tpu.pipeline_mode<synchronous>, transform_indices = @transform_6, window_bounds = array<i64: 12, 1>}, {pipeline_mode = #tpu.pipeline_mode<synchronous>, transform_indices = @transform_7, window_bounds = array<i64: 4, 108>}, {pipeline_mode = #tpu.pipeline_mode<synchronous>, transform_indices = @transform_8, window_bounds = array<i64: 4, 1>}, {transform_indices = @transform_9, window_bounds = array<i64: 1, 4, 256>}]} {
    %c0 = arith.constant 0 : index
    %c0_0 = arith.constant 0 : index
    %c0_1 = arith.constant 0 : index
    %0 = vector.load %arg1[%c0, %c0_0, %c0_1] : memref<1x4x256xf32, #tpu.memory_space<vmem>>, vector<1x4x256xf32>
    %1 = vector.shape_cast %0 : vector<1x4x256xf32> to vector<4x256xf32>
    %2 = tpu.iota {dimensions = array<i32: 1>} : vector<1x256xi32>
    %c16_i32 = arith.constant 16 : i32
    %c0_i32 = arith.constant 0 : i32
    %3 = arith.cmpi eq, %c16_i32, %c0_i32 : i32
    %c1_i32 = arith.constant 1 : i32
    %4 = arith.select %3, %c1_i32, %c16_i32 : i32
    %5 = vector.broadcast %4 : i32 to vector<1x256xi32>
    %6 = arith.remsi %2, %5 : vector<1x256xi32>
    %c0_i32_2 = arith.constant 0 : i32
    %7 = vector.broadcast %c0_i32_2 : i32 to vector<1x256xi32>
    %8 = arith.cmpi ne, %6, %7 : vector<1x256xi32>
    %c0_i32_3 = arith.constant 0 : i32
    %9 = vector.broadcast %c0_i32_3 : i32 to vector<1x256xi32>
    %10 = arith.cmpi slt, %6, %9 : vector<1x256xi32>
    %c0_i32_4 = arith.constant 0 : i32
    %11 = arith.cmpi slt, %4, %c0_i32_4 : i32
    %12 = vector.broadcast %11 : i1 to vector<1x256xi1>
    %13 = vector.broadcast %12 : vector<1x256xi1> to vector<1x256xi1>
    %14 = arith.xori %10, %13 : vector<1x256xi1>
    %15 = arith.andi %14, %8 : vector<1x256xi1>
    %16 = vector.broadcast %4 : i32 to vector<1x256xi32>
    %17 = arith.addi %6, %16 : vector<1x256xi32>
    %18 = arith.select %15, %17, %6 : vector<1x256xi1>, vector<1x256xi32>
    %c-2_i32 = arith.constant -2 : i32
    %19 = vector.broadcast %c-2_i32 : i32 to vector<1x256xi32>
    %20 = arith.addi %18, %19 : vector<1x256xi32>
    %c0_i32_5 = arith.constant 0 : i32
    %21 = vector.broadcast %c0_i32_5 : i32 to vector<1x256xi32>
    %22 = arith.cmpi sge, %20, %21 : vector<1x256xi32>
    %c-2_i32_6 = arith.constant -2 : i32
    %23 = vector.broadcast %c-2_i32_6 : i32 to vector<1x256xi32>
    %24 = arith.addi %18, %23 : vector<1x256xi32>
    %c16_i32_7 = arith.constant 16 : i32
    %25 = vector.broadcast %c16_i32_7 : i32 to vector<1x256xi32>
    %26 = arith.cmpi slt, %24, %25 : vector<1x256xi32>
    %27 = arith.andi %22, %26 : vector<1x256xi1>
    %28 = arith.extui %27 : vector<1x256xi1> to vector<1x256xi32>
    %29 = arith.sitofp %28 : vector<1x256xi32> to vector<1x256xf32>
    %c-1_i32 = arith.constant -1 : i32
    %30 = vector.broadcast %c-1_i32 : i32 to vector<1x256xi32>
    %31 = arith.addi %18, %30 : vector<1x256xi32>
    %c0_i32_8 = arith.constant 0 : i32
    %32 = vector.broadcast %c0_i32_8 : i32 to vector<1x256xi32>
    %33 = arith.cmpi sge, %31, %32 : vector<1x256xi32>
    %c-1_i32_9 = arith.constant -1 : i32
    %34 = vector.broadcast %c-1_i32_9 : i32 to vector<1x256xi32>
    %35 = arith.addi %18, %34 : vector<1x256xi32>
    %c16_i32_10 = arith.constant 16 : i32
    %36 = vector.broadcast %c16_i32_10 : i32 to vector<1x256xi32>
    %37 = arith.cmpi slt, %35, %36 : vector<1x256xi32>
    %38 = arith.andi %33, %37 : vector<1x256xi1>
    %39 = arith.extui %38 : vector<1x256xi1> to vector<1x256xi32>
    %40 = arith.sitofp %39 : vector<1x256xi32> to vector<1x256xf32>
    %c1_i32_11 = arith.constant 1 : i32
    %41 = vector.broadcast %c1_i32_11 : i32 to vector<1x256xi32>
    %42 = arith.addi %18, %41 : vector<1x256xi32>
    %c0_i32_12 = arith.constant 0 : i32
    %43 = vector.broadcast %c0_i32_12 : i32 to vector<1x256xi32>
    %44 = arith.cmpi sge, %42, %43 : vector<1x256xi32>
    %c1_i32_13 = arith.constant 1 : i32
    %45 = vector.broadcast %c1_i32_13 : i32 to vector<1x256xi32>
    %46 = arith.addi %18, %45 : vector<1x256xi32>
    %c16_i32_14 = arith.constant 16 : i32
    %47 = vector.broadcast %c16_i32_14 : i32 to vector<1x256xi32>
    %48 = arith.cmpi slt, %46, %47 : vector<1x256xi32>
    %49 = arith.andi %44, %48 : vector<1x256xi1>
    %50 = arith.extui %49 : vector<1x256xi1> to vector<1x256xi32>
    %51 = arith.sitofp %50 : vector<1x256xi32> to vector<1x256xf32>
    %c2_i32 = arith.constant 2 : i32
    %52 = vector.broadcast %c2_i32 : i32 to vector<1x256xi32>
    %53 = arith.addi %18, %52 : vector<1x256xi32>
    %c0_i32_15 = arith.constant 0 : i32
    %54 = vector.broadcast %c0_i32_15 : i32 to vector<1x256xi32>
    %55 = arith.cmpi sge, %53, %54 : vector<1x256xi32>
    %c2_i32_16 = arith.constant 2 : i32
    %56 = vector.broadcast %c2_i32_16 : i32 to vector<1x256xi32>
    %57 = arith.addi %18, %56 : vector<1x256xi32>
    %c16_i32_17 = arith.constant 16 : i32
    %58 = vector.broadcast %c16_i32_17 : i32 to vector<1x256xi32>
    %59 = arith.cmpi slt, %57, %58 : vector<1x256xi32>
    %60 = arith.andi %55, %59 : vector<1x256xi1>
    %61 = arith.extui %60 : vector<1x256xi1> to vector<1x256xi32>
    %62 = arith.sitofp %61 : vector<1x256xi32> to vector<1x256xf32>
    %cst = arith.constant 0.000000e+00 : f32
    %63 = vector.broadcast %cst : f32 to vector<4x34xf32>
    %64 = tpu.concatenate %63, %1, %63 in 1 : vector<4x34xf32>, vector<4x256xf32>, vector<4x34xf32> -> vector<4x324xf32>
    %65 = vector.extract_strided_slice %64 {offsets = [0, 17], sizes = [4, 256], strides = [1, 1]} : vector<4x324xf32> to vector<4x256xf32>
    %66 = vector.broadcast %40 : vector<1x256xf32> to vector<4x256xf32>
    %67 = arith.mulf %65, %66 : vector<4x256xf32>
    %68 = vector.extract_strided_slice %64 {offsets = [0, 18], sizes = [4, 256], strides = [1, 1]} : vector<4x324xf32> to vector<4x256xf32>
    %69 = vector.extract_strided_slice %64 {offsets = [0, 19], sizes = [4, 256], strides = [1, 1]} : vector<4x324xf32> to vector<4x256xf32>
    %70 = vector.broadcast %51 : vector<1x256xf32> to vector<4x256xf32>
    %71 = arith.mulf %69, %70 : vector<4x256xf32>
    %72 = vector.extract_strided_slice %64 {offsets = [0, 33], sizes = [4, 256], strides = [1, 1]} : vector<4x324xf32> to vector<4x256xf32>
    %73 = vector.broadcast %40 : vector<1x256xf32> to vector<4x256xf32>
    %74 = arith.mulf %72, %73 : vector<4x256xf32>
    %75 = vector.extract_strided_slice %64 {offsets = [0, 34], sizes = [4, 256], strides = [1, 1]} : vector<4x324xf32> to vector<4x256xf32>
    %76 = vector.extract_strided_slice %64 {offsets = [0, 35], sizes = [4, 256], strides = [1, 1]} : vector<4x324xf32> to vector<4x256xf32>
    %77 = vector.broadcast %51 : vector<1x256xf32> to vector<4x256xf32>
    %78 = arith.mulf %76, %77 : vector<4x256xf32>
    %79 = vector.extract_strided_slice %64 {offsets = [0, 49], sizes = [4, 256], strides = [1, 1]} : vector<4x324xf32> to vector<4x256xf32>
    %80 = vector.broadcast %40 : vector<1x256xf32> to vector<4x256xf32>
    %81 = arith.mulf %79, %80 : vector<4x256xf32>
    %82 = vector.extract_strided_slice %64 {offsets = [0, 50], sizes = [4, 256], strides = [1, 1]} : vector<4x324xf32> to vector<4x256xf32>
    %83 = vector.extract_strided_slice %64 {offsets = [0, 51], sizes = [4, 256], strides = [1, 1]} : vector<4x324xf32> to vector<4x256xf32>
    %84 = vector.broadcast %51 : vector<1x256xf32> to vector<4x256xf32>
    %85 = arith.mulf %83, %84 : vector<4x256xf32>
    %86 = tpu.concatenate %67, %68, %71, %74, %75, %78, %81, %82, %85 in 0 : vector<4x256xf32>, vector<4x256xf32>, vector<4x256xf32>, vector<4x256xf32>, vector<4x256xf32>, vector<4x256xf32>, vector<4x256xf32>, vector<4x256xf32>, vector<4x256xf32> -> vector<36x256xf32>
    %c0_18 = arith.constant 0 : index
    %c0_19 = arith.constant 0 : index
    %87 = vector.load %arg2[%c0_18, %c0_19] : memref<4x36xf32, #tpu.memory_space<vmem>>, vector<4x36xf32>
    %cst_20 = arith.constant dense<0.000000e+00> : vector<4x256xf32>
    %88 = tpu.matmul %87, %86, %cst_20 {dimension_numbers = #tpu.dot_dimension_numbers<[1], [0], [0], [1], [0, 0, 1, 1], [], []>} : vector<4x36xf32>, vector<36x256xf32>, vector<4x256xf32> -> vector<4x256xf32>
    %c0_21 = arith.constant 0 : index
    %c0_22 = arith.constant 0 : index
    %89 = vector.load %arg3[%c0_21, %c0_22] : memref<4x1xf32, #tpu.memory_space<vmem>>, vector<4x1xf32>
    %90 = vector.broadcast %89 : vector<4x1xf32> to vector<4x256xf32>
    %91 = arith.addf %88, %90 : vector<4x256xf32>
    %cst_23 = arith.constant dense<0.000000e+00> : vector<256xf32>
    %92 = vector.multi_reduction <add>, %1, %cst_23 [0] : vector<4x256xf32> to vector<256xf32>
    %93 = vector.shape_cast %92 : vector<256xf32> to vector<1x256xf32>
    %cst_24 = arith.constant 0.000000e+00 : f32
    %94 = vector.broadcast %cst_24 : f32 to vector<1x34xf32>
    %95 = tpu.concatenate %94, %93, %94 in 1 : vector<1x34xf32>, vector<1x256xf32>, vector<1x34xf32> -> vector<1x324xf32>
    %96 = vector.extract_strided_slice %95 {offsets = [0, 34], sizes = [1, 256], strides = [1, 1]} : vector<1x324xf32> to vector<1x256xf32>
    %97 = vector.extract_strided_slice %95 {offsets = [0, 33], sizes = [1, 256], strides = [1, 1]} : vector<1x324xf32> to vector<1x256xf32>
    %98 = arith.mulf %97, %40 : vector<1x256xf32>
    %99 = arith.addf %96, %98 : vector<1x256xf32>
    %100 = vector.extract_strided_slice %95 {offsets = [0, 35], sizes = [1, 256], strides = [1, 1]} : vector<1x324xf32> to vector<1x256xf32>
    %101 = arith.mulf %100, %51 : vector<1x256xf32>
    %102 = arith.addf %99, %101 : vector<1x256xf32>
    %103 = vector.extract_strided_slice %95 {offsets = [0, 32], sizes = [1, 256], strides = [1, 1]} : vector<1x324xf32> to vector<1x256xf32>
    %104 = arith.mulf %103, %29 : vector<1x256xf32>
    %105 = arith.addf %102, %104 : vector<1x256xf32>
    %106 = vector.extract_strided_slice %95 {offsets = [0, 36], sizes = [1, 256], strides = [1, 1]} : vector<1x324xf32> to vector<1x256xf32>
    %107 = arith.mulf %106, %62 : vector<1x256xf32>
    %108 = arith.addf %105, %107 : vector<1x256xf32>
    %109 = vector.extract_strided_slice %95 {offsets = [0, 18], sizes = [1, 256], strides = [1, 1]} : vector<1x324xf32> to vector<1x256xf32>
    %110 = arith.addf %108, %109 : vector<1x256xf32>
    %111 = vector.extract_strided_slice %95 {offsets = [0, 50], sizes = [1, 256], strides = [1, 1]} : vector<1x324xf32> to vector<1x256xf32>
    %112 = arith.addf %110, %111 : vector<1x256xf32>
    %113 = vector.extract_strided_slice %95 {offsets = [0, 2], sizes = [1, 256], strides = [1, 1]} : vector<1x324xf32> to vector<1x256xf32>
    %114 = arith.addf %112, %113 : vector<1x256xf32>
    %115 = vector.extract_strided_slice %95 {offsets = [0, 66], sizes = [1, 256], strides = [1, 1]} : vector<1x324xf32> to vector<1x256xf32>
    %116 = arith.addf %114, %115 : vector<1x256xf32>
    %117 = vector.extract_strided_slice %95 {offsets = [0, 34], sizes = [1, 256], strides = [1, 1]} : vector<1x324xf32> to vector<1x256xf32>
    %118 = vector.extract_strided_slice %95 {offsets = [0, 17], sizes = [1, 256], strides = [1, 1]} : vector<1x324xf32> to vector<1x256xf32>
    %119 = arith.mulf %118, %40 : vector<1x256xf32>
    %120 = arith.addf %117, %119 : vector<1x256xf32>
    %121 = vector.extract_strided_slice %95 {offsets = [0, 19], sizes = [1, 256], strides = [1, 1]} : vector<1x324xf32> to vector<1x256xf32>
    %122 = arith.mulf %121, %51 : vector<1x256xf32>
    %123 = arith.addf %120, %122 : vector<1x256xf32>
    %124 = vector.extract_strided_slice %95 {offsets = [0, 49], sizes = [1, 256], strides = [1, 1]} : vector<1x324xf32> to vector<1x256xf32>
    %125 = arith.mulf %124, %40 : vector<1x256xf32>
    %126 = arith.addf %123, %125 : vector<1x256xf32>
    %127 = vector.extract_strided_slice %95 {offsets = [0, 51], sizes = [1, 256], strides = [1, 1]} : vector<1x324xf32> to vector<1x256xf32>
    %128 = arith.mulf %127, %51 : vector<1x256xf32>
    %129 = arith.addf %126, %128 : vector<1x256xf32>
    %130 = vector.extract_strided_slice %95 {offsets = [0, 0], sizes = [1, 256], strides = [1, 1]} : vector<1x324xf32> to vector<1x256xf32>
    %131 = arith.mulf %130, %29 : vector<1x256xf32>
    %132 = arith.addf %129, %131 : vector<1x256xf32>
    %133 = vector.extract_strided_slice %95 {offsets = [0, 4], sizes = [1, 256], strides = [1, 1]} : vector<1x324xf32> to vector<1x256xf32>
    %134 = arith.mulf %133, %62 : vector<1x256xf32>
    %135 = arith.addf %132, %134 : vector<1x256xf32>
    %136 = vector.extract_strided_slice %95 {offsets = [0, 64], sizes = [1, 256], strides = [1, 1]} : vector<1x324xf32> to vector<1x256xf32>
    %137 = arith.mulf %136, %29 : vector<1x256xf32>
    %138 = arith.addf %135, %137 : vector<1x256xf32>
    %139 = vector.extract_strided_slice %95 {offsets = [0, 68], sizes = [1, 256], strides = [1, 1]} : vector<1x324xf32> to vector<1x256xf32>
    %140 = arith.mulf %139, %62 : vector<1x256xf32>
    %141 = arith.addf %138, %140 : vector<1x256xf32>
    %142 = vector.shape_cast %116 : vector<1x256xf32> to vector<1x256xf32>
    %143 = vector.broadcast %142 : vector<1x256xf32> to vector<4x256xf32>
    %144 = vector.shape_cast %141 : vector<1x256xf32> to vector<1x256xf32>
    %145 = vector.broadcast %144 : vector<1x256xf32> to vector<4x256xf32>
    %146 = tpu.concatenate %91, %143, %145 in 0 : vector<4x256xf32>, vector<4x256xf32>, vector<4x256xf32> -> vector<12x256xf32>
    %cst_25 = arith.constant dense<0.000000e+00> : vector<12xf32>
    %147 = vector.multi_reduction <add>, %146, %cst_25 [1] : vector<12x256xf32> to vector<12xf32>
    %148 = vector.shape_cast %147 : vector<12xf32> to vector<12x1xf32>
    %cst_26 = arith.constant 2.560000e+02 : f32
    %149 = vector.broadcast %cst_26 : f32 to vector<12x1xf32>
    %150 = arith.divf %148, %149 : vector<12x1xf32>
    %c0_27 = arith.constant 0 : index
    %c0_28 = arith.constant 0 : index
    %151 = vector.load %arg4[%c0_27, %c0_28] : memref<12x12xf32, #tpu.memory_space<vmem>>, vector<12x12xf32>
    %152 = vector.broadcast %150 : vector<12x1xf32> to vector<12x12xf32>
    %153 = arith.mulf %152, %151 : vector<12x12xf32>
    %cst_29 = arith.constant dense<0.000000e+00> : vector<12xf32>
    %154 = vector.multi_reduction <add>, %153, %cst_29 [0] : vector<12x12xf32> to vector<12xf32>
    %155 = vector.shape_cast %154 : vector<12xf32> to vector<1x12xf32>
    %c0_30 = arith.constant 0 : index
    %c0_31 = arith.constant 0 : index
    %156 = vector.load %arg5[%c0_30, %c0_31] : memref<1x12xf32, #tpu.memory_space<vmem>>, vector<1x12xf32>
    %157 = arith.addf %155, %156 : vector<1x12xf32>
    %cst_32 = arith.constant 0.000000e+00 : f32
    %158 = vector.broadcast %cst_32 : f32 to vector<1x12xf32>
    %159 = arith.maximumf %157, %158 : vector<1x12xf32>
    %c0_33 = arith.constant 0 : index
    %c0_34 = arith.constant 0 : index
    %160 = vector.load %arg6[%c0_33, %c0_34] : memref<12x12xf32, #tpu.memory_space<vmem>>, vector<12x12xf32>
    %161 = vector.broadcast %159 : vector<1x12xf32> to vector<12x12xf32>
    %162 = arith.mulf %160, %161 : vector<12x12xf32>
    %cst_35 = arith.constant dense<0.000000e+00> : vector<12xf32>
    %163 = vector.multi_reduction <add>, %162, %cst_35 [1] : vector<12x12xf32> to vector<12xf32>
    %164 = vector.shape_cast %163 : vector<12xf32> to vector<12x1xf32>
    %c0_36 = arith.constant 0 : index
    %c0_37 = arith.constant 0 : index
    %165 = vector.load %arg7[%c0_36, %c0_37] : memref<12x1xf32, #tpu.memory_space<vmem>>, vector<12x1xf32>
    %166 = arith.addf %164, %165 : vector<12x1xf32>
    %167 = arith.negf %166 : vector<12x1xf32>
    %168 = math.exp %167 : vector<12x1xf32>
    %cst_38 = arith.constant 1.000000e+00 : f32
    %169 = vector.broadcast %cst_38 : f32 to vector<12x1xf32>
    %170 = arith.addf %169, %168 : vector<12x1xf32>
    %171 = arith.divf %169, %170 : vector<12x1xf32>
    %172 = vector.broadcast %171 : vector<12x1xf32> to vector<12x256xf32>
    %173 = arith.mulf %146, %172 : vector<12x256xf32>
    %cst_39 = arith.constant 0.000000e+00 : f32
    %174 = vector.broadcast %cst_39 : f32 to vector<12x256xf32>
    %175 = arith.maximumf %173, %174 : vector<12x256xf32>
    %cst_40 = arith.constant 0.000000e+00 : f32
    %176 = vector.broadcast %cst_40 : f32 to vector<12x34xf32>
    %177 = tpu.concatenate %176, %175, %176 in 1 : vector<12x34xf32>, vector<12x256xf32>, vector<12x34xf32> -> vector<12x324xf32>
    %178 = vector.extract_strided_slice %177 {offsets = [0, 17], sizes = [12, 256], strides = [1, 1]} : vector<12x324xf32> to vector<12x256xf32>
    %179 = vector.broadcast %40 : vector<1x256xf32> to vector<12x256xf32>
    %180 = arith.mulf %178, %179 : vector<12x256xf32>
    %181 = vector.extract_strided_slice %177 {offsets = [0, 18], sizes = [12, 256], strides = [1, 1]} : vector<12x324xf32> to vector<12x256xf32>
    %182 = vector.extract_strided_slice %177 {offsets = [0, 19], sizes = [12, 256], strides = [1, 1]} : vector<12x324xf32> to vector<12x256xf32>
    %183 = vector.broadcast %51 : vector<1x256xf32> to vector<12x256xf32>
    %184 = arith.mulf %182, %183 : vector<12x256xf32>
    %185 = vector.extract_strided_slice %177 {offsets = [0, 33], sizes = [12, 256], strides = [1, 1]} : vector<12x324xf32> to vector<12x256xf32>
    %186 = vector.broadcast %40 : vector<1x256xf32> to vector<12x256xf32>
    %187 = arith.mulf %185, %186 : vector<12x256xf32>
    %188 = vector.extract_strided_slice %177 {offsets = [0, 34], sizes = [12, 256], strides = [1, 1]} : vector<12x324xf32> to vector<12x256xf32>
    %189 = vector.extract_strided_slice %177 {offsets = [0, 35], sizes = [12, 256], strides = [1, 1]} : vector<12x324xf32> to vector<12x256xf32>
    %190 = vector.broadcast %51 : vector<1x256xf32> to vector<12x256xf32>
    %191 = arith.mulf %189, %190 : vector<12x256xf32>
    %192 = vector.extract_strided_slice %177 {offsets = [0, 49], sizes = [12, 256], strides = [1, 1]} : vector<12x324xf32> to vector<12x256xf32>
    %193 = vector.broadcast %40 : vector<1x256xf32> to vector<12x256xf32>
    %194 = arith.mulf %192, %193 : vector<12x256xf32>
    %195 = vector.extract_strided_slice %177 {offsets = [0, 50], sizes = [12, 256], strides = [1, 1]} : vector<12x324xf32> to vector<12x256xf32>
    %196 = vector.extract_strided_slice %177 {offsets = [0, 51], sizes = [12, 256], strides = [1, 1]} : vector<12x324xf32> to vector<12x256xf32>
    %197 = vector.broadcast %51 : vector<1x256xf32> to vector<12x256xf32>
    %198 = arith.mulf %196, %197 : vector<12x256xf32>
    %199 = tpu.concatenate %180, %181, %184, %187, %188, %191, %194, %195, %198 in 0 : vector<12x256xf32>, vector<12x256xf32>, vector<12x256xf32>, vector<12x256xf32>, vector<12x256xf32>, vector<12x256xf32>, vector<12x256xf32>, vector<12x256xf32>, vector<12x256xf32> -> vector<108x256xf32>
    %c0_41 = arith.constant 0 : index
    %c0_42 = arith.constant 0 : index
    %200 = vector.load %arg8[%c0_41, %c0_42] : memref<4x108xf32, #tpu.memory_space<vmem>>, vector<4x108xf32>
    %cst_43 = arith.constant dense<0.000000e+00> : vector<4x256xf32>
    %201 = tpu.matmul %200, %199, %cst_43 {dimension_numbers = #tpu.dot_dimension_numbers<[1], [0], [0], [1], [0, 0, 1, 1], [], []>} : vector<4x108xf32>, vector<108x256xf32>, vector<4x256xf32> -> vector<4x256xf32>
    %c0_44 = arith.constant 0 : index
    %c0_45 = arith.constant 0 : index
    %202 = vector.load %arg9[%c0_44, %c0_45] : memref<4x1xf32, #tpu.memory_space<vmem>>, vector<4x1xf32>
    %203 = vector.broadcast %202 : vector<4x1xf32> to vector<4x256xf32>
    %204 = arith.addf %201, %203 : vector<4x256xf32>
    %205 = arith.addf %1, %204 : vector<4x256xf32>
    %c0_46 = arith.constant 0 : index
    %c0_47 = arith.constant 0 : index
    %c0_48 = arith.constant 0 : index
    %206 = vector.load %arg10[%c0_46, %c0_47, %c0_48] : memref<1x4x256xf32, #tpu.memory_space<vmem>>, vector<1x4x256xf32>
    %207 = vector.shape_cast %206 : vector<1x4x256xf32> to vector<4x256xf32>
    %208 = vector.shape_cast %205 : vector<4x256xf32> to vector<1x4x256xf32>
    tpu.vector_store %arg10[%c0_46, %c0_47, %c0_48], %208 {strides = array<i32>} : memref<1x4x256xf32, #tpu.memory_space<vmem>>, vector<1x4x256xf32>,
    return
  }
  func.func @transform_0(%arg0: i32) -> (i32, i32, i32) {
    %c0_i32 = arith.constant 0 : i32
    %c0_i32_0 = arith.constant 0 : i32
    %c0_i32_1 = arith.constant 0 : i32
    return %arg0, %c0_i32, %c0_i32_0 : i32, i32, i32
  }
  func.func @transform_1(%arg0: i32) -> (i32, i32) {
    %c0_i32 = arith.constant 0 : i32
    %c0_i32_0 = arith.constant 0 : i32
    %c0_i32_1 = arith.constant 0 : i32
    return %c0_i32, %c0_i32_0 : i32, i32
  }
  func.func @transform_2(%arg0: i32) -> (i32, i32) {
    %c0_i32 = arith.constant 0 : i32
    %c0_i32_0 = arith.constant 0 : i32
    %c0_i32_1 = arith.constant 0 : i32
    return %c0_i32, %c0_i32_0 : i32, i32
  }
  func.func @transform_3(%arg0: i32) -> (i32, i32) {
    %c0_i32 = arith.constant 0 : i32
    %c0_i32_0 = arith.constant 0 : i32
    %c0_i32_1 = arith.constant 0 : i32
    return %c0_i32, %c0_i32_0 : i32, i32
  }
  func.func @transform_4(%arg0: i32) -> (i32, i32) {
    %c0_i32 = arith.constant 0 : i32
    %c0_i32_0 = arith.constant 0 : i32
    %c0_i32_1 = arith.constant 0 : i32
    return %c0_i32, %c0_i32_0 : i32, i32
  }
  func.func @transform_5(%arg0: i32) -> (i32, i32) {
    %c0_i32 = arith.constant 0 : i32
    %c0_i32_0 = arith.constant 0 : i32
    %c0_i32_1 = arith.constant 0 : i32
    return %c0_i32, %c0_i32_0 : i32, i32
  }
  func.func @transform_6(%arg0: i32) -> (i32, i32) {
    %c0_i32 = arith.constant 0 : i32
    %c0_i32_0 = arith.constant 0 : i32
    %c0_i32_1 = arith.constant 0 : i32
    return %c0_i32, %c0_i32_0 : i32, i32
  }
  func.func @transform_7(%arg0: i32) -> (i32, i32) {
    %c0_i32 = arith.constant 0 : i32
    %c0_i32_0 = arith.constant 0 : i32
    %c0_i32_1 = arith.constant 0 : i32
    return %c0_i32, %c0_i32_0 : i32, i32
  }
  func.func @transform_8(%arg0: i32) -> (i32, i32) {
    %c0_i32 = arith.constant 0 : i32
    %c0_i32_0 = arith.constant 0 : i32
    %c0_i32_1 = arith.constant 0 : i32
    return %c0_i32, %c0_i32_0 : i32, i32
  }
  func.func @transform_9(%arg0: i32) -> (i32, i32, i32) {
    %c0_i32 = arith.constant 0 : i32
    %c0_i32_0 = arith.constant 0 : i32
    %c0_i32_1 = arith.constant 0 : i32
    return %arg0, %c0_i32, %c0_i32_0 : i32, i32, i32
  }
}

</mosaic_0001>

<bundles_post_ra>
// kernel: tpu_custom_call.1
= control target key start
LH: loop header
LB: loop body
LE: loop exit
PB: predicated region body
PF: predicated region fallthrough
CT: control target
= control target key end

     0   :  { %14 = vsyncpa [#allocation3], 0  ;;  %s3622_s0 = inlined_call_operand.vmem [shape: f32[2,4,256], index: 0, kind: input, shape index: {}]   ;;  %s3623_s1 = inlined_call_operand.vmem [shape: f32[4,36], index: 1, kind: input, shape index: {}]   ;;  %s3624_s2 = inlined_call_operand.vmem [shape: f32[4,1], index: 2, kind: input, shape index: {}]   ;;  %s3625_s3 = inlined_call_operand.hbm [shape: f32[12,12], index: 3, kind: input, shape index: {}]   ;;  %s3626_s4 = inlined_call_operand.vmem [shape: f32[1,12], index: 4, kind: input, shape index: {}]   ;;  %s3627_s5 = inlined_call_operand.hbm [shape: f32[12,12], index: 5, kind: input, shape index: {}]   ;;  %s3628_s6 = inlined_call_operand.vmem [shape: f32[12,1], index: 6, kind: input, shape index: {}]   ;;  %s3629_s7 = inlined_call_operand.vmem [shape: f32[4,108], index: 7, kind: input, shape index: {}]   ;;  %s3630_s8 = inlined_call_operand.vmem [shape: f32[4,1], index: 8, kind: input, shape index: {}]   ;;  %s3631_s9 = inlined_call_operand.hbm [shape: f32[2,4,256], index: 9, kind: output, shape index: {}]  }
   0x1   :  { %15 = vsyncpa [#allocation6], 0 }
   0x2   :  { %16 = vsyncpa [#allocation4], 0 }
   0x3   :  { %18 = vsyncpa [#allocation4 + $0x1], 0  ;;  %s2575_s30 = smov 0   ;;  %s2577_s10 = smov 0  }
   0x4   :  { %s2579_s11 = smov 0   ;;  %s2581_s12 = smov 0  }
   0x5 LB: > { %s2596_s13 = sadd.s32 4294967295, %s2489_s12   ;;  %s1893_s14 = sadd.s32 4294967294, %s2489_s12   ;;  %s2489_s12 = sphi %s2581_s12, %s3657_s12   ;;  %s2485_s11 = sphi %s2579_s11, %s3656_s11   ;;  %s2481_s10 = sphi %s2577_s10, %s3655_s10   ;;  %s2477_s30 = sphi %s2575_s30, %s3654_s30  }
   0x6   : > { %s2600_s15 = sadd.s32 1, %s2489_s12   ;;  %s225_s16 = sadd.s32 1, %s2485_s11 }
   0x7   : > { %s222_s17 = ssub.s32 %s2489_s12, %s2600_s15  ;;  %p235_p0 = scmp.ne.s32.totalorder %s2485_s11, %s2481_s10 }
   0x8   : > { %p223_p1 = scmp.eq.s32.totalorder %s222_s17, 0  ;;  %p236_p2 = scmp.eq.s32.totalorder %s2596_s13, 1 }
   0x9   : > { %p241_p3 = scmp.ne.s32.totalorder %s2481_s10, %s2477_s30  ;;  %p242_p4 = scmp.eq.s32.totalorder %s1893_s14, 1 }
   0xa   : > { %s2611_s18 = scalar_select %p223_p1, %s2485_s11, %s225_s16  }
   0xb   : > { %p2613_p5 = por %p236_p2, %p235_p0  ;;  %p2617_p6 = por %p242_p4, %p241_p3 }
   0xc   : > { %p1894_p7 = scmp.ge.s32.totalorder %s2489_s12, 1  ;;  %p249_p8 = scmp.lt.s32.totalorder %s2489_s12, 3 }
   0xd   : > { %p1950_p9 = scmp.eq.s32.totalorder %s2596_s13, 0  ;;  %s266_s24 = sshll.u32 %s3625_s3, 4  ;;  %s267_s24 = int_to_ptr.hbm [resolvable:$true] %s266_s24 }
   0xe   : > { %p2624_p10 = pnand %p1894_p7, %p249_p8  ;;  %s2491_s25 = smov [#allocation2]  }
   0xf   : > { %s268_s26 = sshll.u32 %s2491_s25, 4  ;;  %s283_s29 = sshll.u32 %s3627_s5, 4  ;;  %s269_s26 = int_to_ptr.vmem [resolvable:$true] %s268_s26  ;;  %s284_s29 = int_to_ptr.hbm [resolvable:$true] %s283_s29 }
  0x10   : > { %p1939_p11 = pneg %p2624_p10  ;;  %s2492_s14 = smov 128  }
  0x11   : > { %s2493_s16 = smov 8   ;;  %s2494_s17 = smov [#allocation5]  }
  0x12   : > { %p1940_p12 = pnand %p1950_p9, %p1939_p11  ;;  %s285_s22 = sshll.u32 %s2494_s17, 4  ;;  %s286_s22 = int_to_ptr.vmem [resolvable:$true] %s285_s22 }
  0x13   : > { %318 = sbr.rel (%p2624_p10) target bundleno = 1766 (0x6e6), region = 56 }
  0x14   : > { %1942 = dma.hbm_to_vmem [thread:$0]  (!%p1940_p12), %s267_s24, 256, %s269_s26, [#allocation3], %s2492_s14, %s2492_s14, %s2493_s16  }
  0x15   : > { %1945 = dma.hbm_to_vmem [thread:$0]  (!%p1940_p12), %s284_s29, 256, %s286_s22, [#allocation6], %s2492_s14, %s2492_s14, %s2493_s16  }
  0x18   : > { %2464 = dma.done.wait (%p1950_p9), [#allocation3], 256  }
  0x19   : > { %2466 = vsyncadd (%p1950_p9), [#allocation3], 4294967040 }
  0x1a   : > { %2468 = dma.done.wait (%p1950_p9), [#allocation6], 256  }
  0x1b   : > { %2470 = vsyncadd (%p1950_p9), [#allocation6], 4294967040  ;;  %v366_v0 = vlaneseq  ;;  %p360_p13 = scmp.lt.s32.totalorder %s2596_s13, 1  ;;  %v2495_v10 = vmov 0.0   ;;  %s2496_s27 = smov 19   ;;  %vm651_vm6 = vcmask 1043456  }
  0x1c   : > { %s2497_s28 = smov 51   ;;  %s2498_s29 = smov 49   ;;  %vm449_vm9 = vcmask 277504   ;;  %vm512_vm10 = vcmask 400384   ;;  %vm524_vm11 = vcmask 416768   ;;  %vm476_vm12 = vcmask 154624  }
  0x1d   : > { %v367_v1 = vand.u32 127, %v366_v0  ;;  %s361_s21 = scalar_select %p360_p13, %s2596_s13, 1  ;;  %vm488_vm13 = vcmask 269312   ;;  %vm500_vm14 = vcmask 285696   ;;  %vm857_vm15 = vcmask 261120  }
  0x1e   : > { %s2499_s14 = smov 35   ;;  %s2500_s16 = smov 34  }
  0x1f   : > { %v368_v2 = vadd.s32 128, %v367_v1  ;;  %v2649_v3 = vand.u32 15, %v367_v1  ;;  %s1927_s23 = sshll.u32 %s361_s21, 3  ;;  %s2501_s17 = smov 33  }
  0x20   : > { %s364_s26 = scalar_lea.vmem %s3622_s0, %s1927_s23  ;;  %s2502_s22 = smov 36  }
  0x21   : > { %v2652_v4 = vand.u32 15, %v368_v2  ;;  %v417_v5 = vadd.s32 1, %v2649_v3  ;;  %v405_v6 = vadd.s32 4294967295, %v2649_v3  ;;  %v2661_v9 = vld [vmem:[%s364_s26] sm:$0xff]  ;;  %v429_v17 = vadd.s32 2, %v2649_v3  ;;  %s2503_s21 = smov 4  }
  0x22   : > { %442 = vst [vmem:[#allocation1] ss:$2 sm:$0xff] %v2661_v9  ;;  %s2504_s23 = smov 68   ;;  %s2505_s24 = smov 17   ;;  %v393_v40 = vadd.s32 4294967294, %v2649_v3 }
  0x23   : > { %v418_v7 = vadd.s32 1, %v2652_v4  ;;  %vm421_vm0 = vcmp.lt.s32.totalorder %v417_v5, 16  ;;  %v406_v8 = vadd.s32 4294967295, %v2652_v4  ;;  %vm407_vm1 = vcmp.ge.s32.totalorder %v405_v6, 0  ;;  %s2506_s25 = smov 32   ;;  %s2507_s26 = smov 64  }
  0x24   : > { %v1908_v11 = vsel %vm421_vm0, 1.0, %v2495_v10  ;;  %v1906_v12 = vsel %vm407_vm1, 1.0, %v2495_v10  ;;  %v430_v18 = vadd.s32 2, %v2652_v4  ;;  %vm433_vm4 = vcmp.lt.s32.totalorder %v429_v17, 16 }
  0x25   : > { %vm422_vm2 = vcmp.lt.s32.totalorder %v418_v7, 16  ;;  %vm408_vm3 = vcmp.ge.s32.totalorder %v406_v8, 0  ;;  %v1910_v21 = vsel %vm433_vm4, 1.0, %v2495_v10  ;;  %v394_v41 = vadd.s32 4294967294, %v2652_v4 }
  0x26   : > { %v1909_v13 = vsel %vm422_vm2, 1.0, %v2495_v10  ;;  %v1907_v14 = vsel %vm408_vm3, 1.0, %v2495_v10  ;;  %vm434_vm5 = vcmp.lt.s32.totalorder %v430_v18, 16  ;;  %vm395_vm7 = vcmp.ge.s32.totalorder %v393_v40, 0 }
  0x27   : > { %v2041_v15 = vpack.i.bf16 %v1909_v13, %v1908_v11  ;;  %v2031_v16 = vpack.i.bf16 %v1907_v14, %v1906_v12  ;;  %v1911_v22 = vsel %vm434_vm5, 1.0, %v2495_v10  ;;  %vm396_vm8 = vcmp.ge.s32.totalorder %v394_v41, 0 }
  0x28   : > { %v2056_v27 = vpack.i.bf16 %v1911_v22, %v1910_v21  ;;  %v2683_v42 = vsel %vm395_vm7, 1.0, %v2495_v10  ;;  %v2686_v43 = vsel %vm396_vm8, 1.0, %v2495_v10  ;;  %vm1103_vm0 = vcmask 523264  }
  0x29   : > { %2042 = vrot.lane.b32.xlu0 %v2041_v15, %s2496_s27  ;;  %2022 = vrot.lane.b32.xlu1 %v2041_v15, %s2497_s28  ;;  %v443_v19 = vld.sshfl [vmem:[#allocation1] sm:$0xff pattern:$0x75316420]  ;;  %v444_v20 = vld.sshfl [vmem:[#allocation1 + $0x8] sm:$0xff pattern:$0x75316420]  ;;  %v2051_v44 = vpack.i.bf16 %v2686_v43, %v2683_v42 }
  0x2a   : > { %2032 = vrot.lane.b32.xlu2 %v2031_v16, %s2498_s29  ;;  %779 = vst [vmem:[#allocation1] ss:$2 sm:$0xff] %v2661_v9  ;;  %s2508_s27 = smov 94   ;;  %s2509_s28 = smov 111   ;;  %vm1133_vm1 = vcmask 556032   ;;  %vm648_vm2 = vcmask 769024  }
  0x2b   : > { %s2510_s29 = smov 96   ;;  %vm462_vm3 = vcmask 138240   ;;  %vm543_vm4 = vcmask 1039360   ;;  %vm633_vm5 = vcmask 777216   ;;  %vm621_vm7 = vcmask 785408  }
  0x2c   : > { %vm3639_vm8 = vcmask 1031168  }
  0x31   : > { %2027 = vrot.lane.b32.xlu1 %v2041_v15, %s2499_s14  ;;  %445 = vrot.lane.b32.xlu0 %v443_v19, %s2500_s16  ;;  %v781_v23 = vld.sshfl [vmem:[#allocation1 + $0x8] sm:$0xff pattern:$0x75316420]  ;;  %v780_v24 = vld.sshfl [vmem:[#allocation1] sm:$0xff pattern:$0x75316420] }
  0x32   : > { %2037 = vrot.lane.b32.xlu2 %v2031_v16, %s2501_s17  ;;  %v791_v25 = vsel %vm651_vm6, %v781_v23, 0.0  ;;  %v784_v26 = vsel %vm651_vm6, %v780_v24, 0.0  ;;  %s3634_s14 = smov 95   ;;  %s3636_s17 = smov 127  }
  0x33   : > { %v792_v28 = vrot.slane %v791_v25, 4  ;;  %v785_v29 = vrot.slane %v784_v26, 4 }
  0x35   : > { %v793_v30 = vadd.f32 %v792_v28, %v791_v25  ;;  %v786_v31 = vadd.f32 %v785_v29, %v784_v26 }
  0x37   : > { %v794_v32 = vrot.slane %v793_v30, 2  ;;  %v787_v33 = vrot.slane %v786_v31, 2 }
  0x39   : > { %2057 = vrot.lane.b32.xlu1 %v2056_v27, %s2502_s22  ;;  %447 = vrot.lane.b32.xlu0 %v444_v20, %s2500_s16  ;;  %v795_v34 = vadd.f32 %v794_v32, %v793_v30  ;;  %v788_v36 = vadd.f32 %v787_v33, %v786_v31  ;;  %s2513_s22 = smov 126  }
  0x3a   : > { %2062 = vrot.lane.b32.xlu2 %v2056_v27, %s2503_s21  ;;  %s2514_s21 = smov 112  }
  0x3b   : > { %v796_v35 = vrot.slane %v795_v34, 1  ;;  %v789_v38 = vrot.slane %v788_v36, 1 }
  0x3d   : > { %v797_v37 = vadd.f32 %v796_v35, %v795_v34  ;;  %v790_v39 = vadd.f32 %v789_v38, %v788_v36 }
  0x41   : > { %2072 = vrot.lane.b32.xlu1 %v2056_v27, %s2504_s23  ;;  %2047 = vrot.lane.b32.xlu0 %v2031_v16, %s2505_s24  ;;  %s3632_s23 = smov 110  }
  0x42   : > { %802 = vrot.lane.b32.xlu2 %v797_v37, %s2500_s16 }
  0x49   : > { %800 = vrot.lane.b32.xlu1 %v790_v39, %s2500_s16  ;;  %2052 = vrot.lane.b32.xlu0 %v2051_v44, %s2506_s25 }
  0x51   : > { %2067 = vrot.lane.b32.xlu0 %v2051_v44, %s2507_s26  ;;  %s2516_s26 = smov 1  }
  0x84   : > { %v2033_v50 = vpop.permute.xlu2 %2032 }
  0x85   : > { %v2698_v52 = vunpack.i.h.bf16 %v2033_v50  ;;  %v2701_v53 = vunpack.i.l.bf16 %v2033_v50 }
  0x87   : > { %v2707_v55 = vsel %vm512_vm10, %v2701_v53, %v2698_v52  ;;  %vm3638_vm10 = vcmask 916480  }
  0x8c   : > { %v2038_v3 = vpop.permute.xlu2 %2037 }
  0x8d   : > { %v2734_v6 = vunpack.i.h.bf16 %v2038_v3  ;;  %v2743_v12 = vunpack.i.l.bf16 %v2038_v3 }
  0x8f   : > { %v2756_v16 = vsel %vm488_vm13, %v2743_v12, %v2734_v6  ;;  %vm822_vm13 = vcmask 7168  }
  0x94   : > { %v2808_v50 = vpop.permute.xlu2 %2062 }
  0x9b   : > { %v2043_v45 = vpop.permute.xlu0 %2042  ;;  %v2023_v46 = vpop.permute.xlu1 %2022 }
  0x9c   : > { %v2691_v47 = vunpack.i.l.bf16 %v2023_v46  ;;  %v2703_v54 = vunpack.i.h.bf16 %v2023_v46  ;;  %v2736_v7 = vunpack.i.h.bf16 %v2043_v45  ;;  %v2738_v8 = vunpack.i.l.bf16 %v2043_v45 }
  0x9e   : > { %v2729_v1 = vsel %vm524_vm11, %v2691_v47, %v2703_v54  ;;  %v2752_v15 = vsel %vm476_vm12, %v2738_v8, %v2736_v7  ;;  %vm588_vm11 = vcmask 908288   ;;  %vm606_vm12 = vcmask 900096  }
  0xa3   : > { %v446_v48 = vpop.permute.xlu0 %445  ;;  %v2028_v10 = vpop.permute.xlu1 %2027 }
  0xa4   : > { %v2694_v49 = vsel %vm449_vm9, 0.0, %v446_v48  ;;  %v2745_v13 = vunpack.i.h.bf16 %v2028_v10  ;;  %v2748_v14 = vunpack.i.l.bf16 %v2028_v10 }
  0xa5   : > { %v529_v51 = vmul.f32 %v2691_v47, %v2694_v49  ;;  %v517_v61 = vmul.f32 %v2701_v53, %v2694_v49  ;;  %v534_v2 = vrot.slane %v2694_v49, 4  ;;  %v481_v20 = vmul.f32 %v2738_v8, %v2694_v49 }
  0xa6   : > { %v2762_v18 = vsel %vm500_vm14, %v2748_v14, %v2745_v13  ;;  %v493_v23 = vmul.f32 %v2743_v12, %v2694_v49  ;;  %v505_v26 = vmul.f32 %v2748_v14, %v2694_v49  ;;  %vm731_vm14 = vcmask 293888  }
  0xa7   : > { %642 = vrot.lane.b32.xlu1 %v529_v51, %s2508_s27 }
  0xa8   : > { %v567_v28 = vrot.slane %v493_v23, 4  ;;  %v597_v32 = vrot.slane %v505_v26, 4 }
  0xab   : > { %v448_v56 = vpop.permute.xlu0 %447  ;;  %v2779_v27 = vpop.permute.xlu1 %2057 }
  0xac   : > { %v2710_v57 = vsel %vm449_vm9, %v446_v48, %v448_v56  ;;  %v2713_v58 = vsel %vm449_vm9, %v448_v56, 0.0 }
  0xad   : > { %v531_v59 = vmul.f32 %v2703_v54, %v2713_v58  ;;  %v2076_v60 = vpack.i.bf16 %v2710_v57, %v2694_v49  ;;  %v518_v62 = vmul.f32 %v2707_v55, %v2710_v57  ;;  %v535_v0 = vrot.slane %v2710_v57, 4 }
  0xae   : > { %v530_v5 = vmul.f32 %v2729_v1, %v2710_v57  ;;  %v536_v11 = vrot.slane %v2713_v58, 4  ;;  %v482_v17 = vmul.f32 %v2752_v15, %v2710_v57  ;;  %v519_v19 = vmul.f32 %v2698_v52, %v2713_v58 }
  0xaf   : > { %646 = vrot.lane.b32.xlu0 %v531_v59, %s2508_s27  ;;  %2077 = vrot.lane.b32.xlu2 %v2076_v60, %s2509_s28  ;;  %v2081_v63 = vpack.i.bf16 %v518_v62, %v517_v61  ;;  %v2086_v4 = vpack.i.bf16 %v535_v0, %v534_v2  ;;  %v494_v21 = vmul.f32 %v2756_v16, %v2710_v57  ;;  %v2829_v0 = vpop.permute.xlu2 %802 }
  0xb0   : > { %v2091_v22 = vpack.i.bf16 %v482_v17, %v481_v20  ;;  %v506_v24 = vmul.f32 %v2762_v18, %v2710_v57  ;;  %v483_v31 = vmul.f32 %v2736_v7, %v2713_v58  ;;  %v495_v34 = vmul.f32 %v2734_v6, %v2713_v58 }
  0xb1   : > { %2082 = vrot.lane.b32.xlu1 %v2081_v63, %s2510_s29  ;;  %v568_v25 = vrot.slane %v494_v21, 4  ;;  %v507_v37 = vmul.f32 %v2745_v13, %v2713_v58  ;;  %v2845_v17 = vsel %vm449_vm9, %v2829_v0, 0.0 }
  0xb2   : > { %v598_v29 = vrot.slane %v506_v24, 4  ;;  %v569_v36 = vrot.slane %v495_v34, 4  ;;  %v812_v21 = vmul.f32 %v2734_v6, %v2845_v17 }
  0xb3   : > { %v2106_v30 = vpack.i.bf16 %v568_v25, %v567_v28  ;;  %v2788_v35 = vpop.permute.xlu1 %2072  ;;  %v599_v38 = vrot.slane %v507_v37, 4  ;;  %v2048_v44 = vpop.permute.xlu0 %2047 }
  0xb4   : > { %v2101_v33 = vpack.i.bf16 %v598_v29, %v597_v32  ;;  %v2075_v61 = vunpack.i.h.bf16 %v2788_v35  ;;  %v2074_v62 = vunpack.i.l.bf16 %v2788_v35  ;;  %v2857_v24 = vunpack.i.h.bf16 %v2048_v44 }
  0xb5   : > { %v2859_v25 = vunpack.i.l.bf16 %v2048_v44 }
  0xb6   : > { %v2835_v2 = vsel %vm1133_vm1, %v2074_v62, %v2075_v61  ;;  %vm1073_vm1 = vcmask 31744  }
  0xb7   : > { %2087 = vrot.lane.b32.xlu0 %v2086_v4, %s3634_s14  ;;  %644 = vrot.lane.b32.xlu2 %v530_v5, %s2508_s27  ;;  %v2870_v34 = vsel %vm462_vm3, %v2859_v25, %v2857_v24  ;;  %v467_v44 = vmul.f32 %v2859_v25, %v2694_v49 }
  0xb9   : > { %631 = vrot.lane.b32.xlu1 %v536_v11, %s3634_s14  ;;  %s2520_s14 = smov 16  }
  0xbb   : > { %v2794_v39 = vpop.permute.xlu1 %800  ;;  %v2804_v45 = vpop.permute.xlu0 %2052 }
  0xbc   : > { %v2799_v40 = vsel %vm449_vm9, 0.0, %v2794_v39  ;;  %v2055_v46 = vunpack.i.h.bf16 %v2804_v45  ;;  %v2054_v48 = vunpack.i.l.bf16 %v2804_v45 }
  0xbd   : > { %v810_v41 = vmul.f32 %v2743_v12, %v2799_v40  ;;  %v972_v29 = vmul.f32 %v2859_v25, %v2799_v40 }
  0xbe   : > { %v2815_v51 = vsel %vm857_vm15, %v2054_v48, %v2055_v46 }
  0xbf   : > { %541 = vrot.lane.b32.xlu0 %v536_v11, %s3636_s17  ;;  %619 = vrot.lane.b32.xlu2 %v519_v19, %s2510_s29 }
  0xc1   : > { %2092 = vrot.lane.b32.xlu1 %v2091_v22, %s2513_s22 }
  0xc3   : > { %v2817_v56 = vpop.permute.xlu0 %2067 }
  0xc4   : > { %v2070_v59 = vunpack.i.h.bf16 %v2817_v56  ;;  %v2069_v60 = vunpack.i.l.bf16 %v2817_v56  ;;  %v1140_v56 = vmul.f32 %v2075_v61, %v2845_v17 }
  0xc6   : > { %v2827_v63 = vsel %vm1103_vm0, %v2069_v60, %v2070_v59  ;;  %vm1004_vm0 = vcmask 121856  }
  0xc7   : > { %2107 = vrot.lane.b32.xlu0 %v2106_v30, %s2514_s21  ;;  %556 = vrot.lane.b32.xlu2 %v483_v31, %s2513_s22  ;;  %v974_v30 = vmul.f32 %v2857_v24, %v2845_v17 }
  0xc9   : > { %2102 = vrot.lane.b32.xlu1 %v2101_v33, %s3632_s23 }
  0xcf   : > { %2097 = vrot.lane.b32.xlu2 %v2086_v4, %s3636_s17 }
  0xd1   : > { %574 = vrot.lane.b32.xlu1 %v569_v36, %s2514_s21 }
  0xd7   : > { %604 = vrot.lane.b32.xlu2 %v599_v38, %s3632_s23  ;;  %s2517_s23 = smov 15  }
  0xdf   : > { %816 = vrot.lane.b32.xlu2 %v810_v41, %s2516_s26  ;;  %v469_v41 = vmul.f32 %v2857_v24, %v2713_v58 }
 0x109   : > { %v2837_v3 = vpop.permute.xlu2 %2077 }
 0x111   : > { %v645_v4 = vpop.permute.xlu2 %644 }
 0x119   : > { %v2839_v5 = vpop.permute.xlu2 %619  ;;  %v643_v10 = vpop.permute.xlu1 %642 }
 0x11a   : > { %v649_v11 = vsel %vm648_vm2, %v643_v10, %v645_v4 }
 0x11b   : > { %707 = vrot.lane.b32.xlu1 %v649_v11, %s2509_s28 }
 0x121   : > { %v647_v19 = vpop.permute.xlu0 %646  ;;  %v2847_v20 = vpop.permute.xlu2 %556 }
 0x122   : > { %711 = vrot.lane.b32.xlu0 %v647_v19, %s2509_s28  ;;  %v650_v22 = vsel %vm648_vm2, %v645_v4, %v647_v19  ;;  %v468_v19 = vmul.f32 %v2870_v34, %v2710_v57 }
 0x123   : > { %709 = vrot.lane.b32.xlu2 %v650_v22, %s2509_s28  ;;  %820 = vrot.lane.b32.xlu1 %v812_v21, %s2516_s26  ;;  %v2855_v23 = vpop.permute.xlu1 %2082  ;;  %v831_v21 = vmul.f32 %v2748_v14, %v2799_v40 }
 0x124   : > { %v2085_v4 = vunpack.i.h.bf16 %v2855_v23  ;;  %v2084_v10 = vunpack.i.l.bf16 %v2855_v23 }
 0x129   : > { %v2088_v26 = vpop.permute.xlu0 %2087  ;;  %v2098_v28 = vpop.permute.xlu2 %2097 }
 0x12a   : > { %v2100_v32 = vunpack.i.h.bf16 %v2098_v28  ;;  %v2099_v33 = vunpack.i.l.bf16 %v2098_v28  ;;  %v2090_v36 = vunpack.i.h.bf16 %v2088_v26  ;;  %v2089_v37 = vunpack.i.l.bf16 %v2088_v26 }
 0x12b   : > { %978 = vrot.lane.b32.xlu2 %v972_v29, %s2505_s24  ;;  %982 = vrot.lane.b32.xlu1 %v974_v30, %s2505_s24  ;;  %v632_v31 = vpop.permute.xlu1 %631  ;;  %v833_v28 = vmul.f32 %v2745_v13, %v2845_v17 }
 0x12c   : > { %v544_v38 = vsel %vm543_vm4, %v2099_v33, %v2100_v32  ;;  %v634_v49 = vsel %vm633_vm5, %v2089_v37, %v2090_v36 }
 0x12d   : > { %v652_v23 = vsel %vm651_vm6, %v467_v44, %v544_v38  ;;  %v2080_v44 = vunpack.i.h.bf16 %v2837_v3 }
 0x131   : > { %v542_v11 = vpop.permute.xlu0 %541 }
 0x132   : > { %v545_v22 = vsel %vm543_vm4, %v2100_v32, %v542_v11  ;;  %v654_v26 = vsel %vm651_vm6, %v469_v41, %v542_v11  ;;  %v622_v41 = vsel %vm621_vm7, %v2084_v10, %v2085_v4 }
 0x133   : > { %v653_v29 = vsel %vm651_vm6, %v468_v19, %v545_v22  ;;  %687 = vrot.lane.b32.xlu0 %v654_v26, %s2509_s28  ;;  %837 = vrot.lane.b32.xlu2 %v831_v21, %s3636_s17  ;;  %v2093_v57 = vpop.permute.xlu1 %2092  ;;  %v661_v37 = vsel %vm651_vm6, %v622_v41, %v634_v49  ;;  %v992_v21 = vmul.f32 %v2738_v8, %v2799_v40  ;;  %v2079_v26 = vunpack.i.l.bf16 %v2837_v3 }
 0x134   : > { %841 = vrot.lane.b32.xlu1 %v833_v28, %s3636_s17  ;;  %v2095_v30 = vunpack.i.h.bf16 %v2093_v57  ;;  %v2094_v32 = vunpack.i.l.bf16 %v2093_v57  ;;  %v2121_v33 = vpack.i.bf16 %v653_v29, %v652_v23  ;;  %v994_v22 = vmul.f32 %v2736_v7, %v2845_v17 }
 0x135   : > { %v2111_v38 = vpack.i.bf16 %v661_v37, %v2713_v58  ;;  %v635_v29 = vsel %vm633_vm5, %v2090_v36, %v632_v31  ;;  %v589_v41 = vsel %vm588_vm11, %v2079_v26, %v2080_v44  ;;  %v623_v37 = vsel %vm621_vm7, %v2085_v4, %v2839_v5 }
 0x136   : > { %v559_v11 = vsel %vm3639_vm8, %v2094_v32, %v2095_v30 }
 0x139   : > { %v2108_v19 = vpop.permute.xlu0 %2107 }
 0x13a   : > { %v2110_v28 = vunpack.i.h.bf16 %v2108_v19  ;;  %v2109_v10 = vunpack.i.l.bf16 %v2108_v19  ;;  %v662_v19 = vsel %vm651_vm6, %v623_v37, %v635_v29 }
 0x13b   : > { %998 = vrot.lane.b32.xlu2 %v992_v21, %s2517_s23  ;;  %v2904_v49 = vpop.permute.xlu1 %2102  ;;  %2112 = vrot.lane.b32.xlu0 %v2111_v38, %s2509_s28  ;;  %v663_v21 = vsel %vm651_vm6, %v2839_v5, %v632_v31  ;;  %v560_v5 = vsel %vm3639_vm8, %v2095_v30, %v2847_v20  ;;  %v864_v30 = vmul.f32 %v2055_v46, %v2845_v17 }
 0x13c   : > { %v577_v57 = vsel %vm3638_vm10, %v2109_v10, %v2110_v28  ;;  %1002 = vrot.lane.b32.xlu1 %v994_v22, %s2517_s23  ;;  %v2105_v58 = vunpack.i.h.bf16 %v2904_v49  ;;  %v2104_v23 = vunpack.i.l.bf16 %v2904_v49  ;;  %v2116_v38 = vpack.i.bf16 %v663_v21, %v662_v19 }
 0x13d   : > { %v2913_v32 = vsel %vm651_vm6, %v559_v11, %v577_v57  ;;  %v2932_v11 = vsel %vm449_vm9, %v2794_v39, %v2829_v0  ;;  %v2060_v57 = vunpack.i.h.bf16 %v2779_v27  ;;  %v2064_v19 = vunpack.i.l.bf16 %v2808_v50 }
 0x13e   : > { %v607_v36 = vsel %vm606_vm12, %v2104_v23, %v2105_v58  ;;  %v811_v4 = vmul.f32 %v2932_v11, %v2756_v16  ;;  %v973_v0 = vmul.f32 %v2932_v11, %v2870_v34  ;;  %v1036_v23 = vmul.f32 %v2703_v54, %v2845_v17 }
 0x13f   : > { %v2927_v22 = vsel %vm651_vm6, %v589_v41, %v607_v36  ;;  %v895_v46 = vmul.f32 %v2060_v57, %v2845_v17  ;;  %v605_v41 = vpop.permute.xlu2 %604  ;;  %v1078_v21 = vmul.f32 %v2064_v19, %v2799_v40 }
 0x143   : > { %2122 = vrot.lane.b32.xlu2 %v2121_v33, %s2509_s28  ;;  %v575_v26 = vpop.permute.xlu1 %574  ;;  %818 = vrot.lane.b32.xlu0 %v811_v4, %s2516_s26  ;;  %v832_v33 = vmul.f32 %v2932_v11, %v2762_v18  ;;  %s2518_s26 = smov 2  }
 0x144   : > { %v578_v10 = vsel %vm3638_vm10, %v2110_v28, %v575_v26  ;;  %2117 = vrot.lane.b32.xlu1 %v2116_v38, %s2509_s28  ;;  %v657_v39 = vsel %vm651_vm6, %v2847_v20, %v575_v26  ;;  %v993_v20 = vmul.f32 %v2932_v11, %v2752_v15  ;;  %v1015_v28 = vmul.f32 %v2698_v52, %v2845_v17 }
 0x145   : > { %v656_v31 = vsel %vm651_vm6, %v560_v5, %v578_v10  ;;  %v1108_v5 = vmul.f32 %v2069_v60, %v2799_v40 }
 0x146   : > { %v2136_v29 = vpack.i.bf16 %v657_v39, %v656_v31 }
 0x147   : > { %v2972_v37 = vpop.permute.xlu2 %816 }
 0x14b   : > { %980 = vrot.lane.b32.xlu0 %v973_v0, %s2505_s24  ;;  %s2519_s24 = smov 113  }
 0x14c   : > { %2137 = vrot.lane.b32.xlu1 %v2136_v29, %s2509_s28 }
 0x153   : > { %839 = vrot.lane.b32.xlu0 %v832_v33, %s3636_s17  ;;  %s2522_s17 = smov 98  }
 0x154   : > { %872 = vrot.lane.b32.xlu1 %v864_v30, %s2518_s26 }
 0x15b   : > { %1000 = vrot.lane.b32.xlu0 %v993_v20, %s2517_s23  ;;  %s2521_s23 = smov 30   ;;  %v1138_v20 = vmul.f32 %v2074_v62, %v2799_v40 }
 0x15c   : > { %1023 = vrot.lane.b32.xlu1 %v1015_v28, %s2519_s24 }
 0x164   : > { %903 = vrot.lane.b32.xlu1 %v895_v46, %s2513_s22 }
 0x16c   : > { %1044 = vrot.lane.b32.xlu1 %v1036_v23, %s2509_s28 }
 0x174   : > { %919 = vrot.lane.b32.xlu1 %v2845_v17, %s2520_s14 }
 0x17c   : > { %930 = vrot.lane.b32.xlu1 %v2799_v40, %s2514_s21 }
 0x17d   : > { %v710_v36 = vpop.permute.xlu2 %709 }
 0x184   : > { %1084 = vrot.lane.b32.xlu1 %v1078_v21, %s2521_s23 }
 0x185   : > { %v979_v4 = vpop.permute.xlu2 %978 }
 0x186   : > { %v989_v31 = vadd.f32 %v979_v4, %v2799_v40 }
 0x18c   : > { %944 = vrot.lane.b32.xlu1 %v2799_v40, %s2506_s25 }
 0x18d   : > { %v2983_v38 = vpop.permute.xlu2 %837  ;;  %v708_v26 = vpop.permute.xlu1 %707 }
 0x18e   : > { %v721_v10 = vsel %vm588_vm11, %v708_v26, %v710_v36  ;;  %v608_v26 = vsel %vm606_vm12, %v2105_v58, %v605_v41 }
 0x18f   : > { %1912 = vmatpush.msk.msra.mxu0 %vm651_vm6, %v721_v10 }
 0x194   : > { %1114 = vrot.lane.b32.xlu1 %v1108_v5, %s2522_s17  ;;  %v712_v39 = vpop.permute.xlu0 %711 }
 0x195   : > { %v2992_v0 = vpop.permute.xlu2 %998  ;;  %v821_v29 = vpop.permute.xlu1 %820  ;;  %v722_v33 = vsel %vm588_vm11, %v710_v36, %v712_v39 }
 0x196   : > { %v2996_v30 = vadd.f32 %v2992_v0, %v989_v31  ;;  %1914 = vmatpush.msk.msra.mxu1 %vm651_vm6, %v722_v33 }
 0x19c   : > { %958 = vrot.lane.b32.xlu1 %v2799_v40, %s2510_s29 }
 0x19d   : > { %v983_v60 = vpop.permute.xlu1 %982 }
 0x1a4   : > { %1144 = vrot.lane.b32.xlu1 %v1138_v20, %s2508_s27 }
 0x1a5   : > { %v3005_v28 = vpop.permute.xlu0 %687 }
 0x1a6   : > { %v842_v46 = vpop.permute.xlu1 %841 }
 0x1ad   : > { %v2113_v23 = vpop.permute.xlu0 %2112 }
 0x1ae   : > { %v1003_v36 = vpop.permute.xlu1 %1002  ;;  %v2114_v21 = vunpack.i.l.bf16 %v2113_v23  ;;  %v2115_v3 = vunpack.i.h.bf16 %v2113_v23 }
 0x1b0   : > { %v590_v10 = vsel %vm588_vm11, %v2080_v44, %v2114_v21  ;;  %v660_v5 = vsel %vm651_vm6, %v2114_v21, %v605_v41 }
 0x1b1   : > { %v2131_v62 = vpack.i.bf16 %v2913_v32, %v660_v5  ;;  %v659_v31 = vsel %vm651_vm6, %v590_v10, %v608_v26  ;;  %v862_v10 = vmul.f32 %v2054_v48, %v2799_v40  ;;  %v1013_v48 = vmul.f32 %v2701_v53, %v2799_v40 }
 0x1b2   : > { %v2126_v39 = vpack.i.bf16 %v659_v31, %v2927_v22  ;;  %v863_v22 = vmul.f32 %v2815_v51, %v2932_v11  ;;  %v1014_v51 = vmul.f32 %v2932_v11, %v2707_v55  ;;  %v2059_v31 = vunpack.i.l.bf16 %v2779_v27 }
 0x1b3   : > { %2132 = vrot.lane.b32.xlu0 %v2131_v62, %s2509_s28 }
 0x1b4   : > { %2127 = vrot.lane.b32.xlu2 %v2126_v39, %s2509_s28 }
 0x1b5   : > { %v819_v49 = vpop.permute.xlu0 %818 }
 0x1b6   : > { %v2118_v33 = vpop.permute.xlu1 %2117  ;;  %v824_v58 = vsel %vm822_vm13, %v819_v49, %v821_v29  ;;  %v823_v45 = vsel %vm822_vm13, %v2972_v37, %v819_v49  ;;  %v889_v49 = vsel %vm731_vm14, %v2059_v31, %v2060_v57  ;;  %vm1025_vm13 = vcmask 924672  }
 0x1b7   : > { %v2120_v20 = vunpack.i.h.bf16 %v2118_v33  ;;  %v2119_v44 = vunpack.i.l.bf16 %v2118_v33  ;;  %v830_v41 = vadd.f32 %v824_v58, %v2845_v17 }
 0x1b9   : > { %v719_v32 = vsel %vm588_vm11, %v2115_v3, %v2119_v44  ;;  %v720_v21 = vsel %vm588_vm11, %v2119_v44, %v2120_v20  ;;  %v3025_v26 = vadd.f32 %v842_v46, %v830_v41  ;;  %v894_v20 = vmul.f32 %v889_v49, %v2932_v11 }
 0x1ba   : > { %751 = vmatpush.msra.mxu0 %v719_v32  ;;  %771 = vmatpush.msra.mxu1 %v720_v21  ;;  %v893_v44 = vmul.f32 %v2059_v31, %v2799_v40  ;;  %v1054_v31 = vmul.f32 %v2683_v42, %v2799_v40 }
 0x1bb   : > { %870 = vrot.lane.b32.xlu0 %v863_v22, %s2518_s26 }
 0x1bc   : > { %868 = vrot.lane.b32.xlu2 %v862_v10, %s2518_s26  ;;  %v1035_v10 = vmul.f32 %v2932_v11, %v2729_v1 }
 0x1bd   : > { %v981_v29 = vpop.permute.xlu0 %980 }
 0x1be   : > { %v3032_v23 = vpop.permute.xlu1 %2137  ;;  %v984_v5 = vsel %vm462_vm3, %v979_v4, %v981_v29  ;;  %v985_v62 = vsel %vm462_vm3, %v981_v29, %v983_v60  ;;  %v829_v4 = vadd.f32 %v823_v45, %v2932_v11  ;;  %v1034_v29 = vmul.f32 %v2691_v47, %v2799_v40 }
 0x1bf   : > { %v990_v41 = vadd.f32 %v984_v5, %v2932_v11  ;;  %v2065_v45 = vunpack.i.h.bf16 %v2808_v50  ;;  %v1109_v50 = vmul.f32 %v2827_v63, %v2932_v11  ;;  %v1139_v63 = vmul.f32 %v2835_v2, %v2932_v11 }
 0x1c0   : > { %vm874_vm3 = vcmask 15360  }
 0x1c3   : > { %1021 = vrot.lane.b32.xlu0 %v1014_v51, %s2519_s24  ;;  %v1055_v51 = vmul.f32 %v2686_v43, %v2932_v11  ;;  %v1080_v43 = vmul.f32 %v2065_v45, %v2845_v17 }
 0x1c4   : > { %1019 = vrot.lane.b32.xlu2 %v1013_v48, %s2519_s24  ;;  %v1074_v48 = vsel %vm1073_vm1, %v2064_v19, %v2065_v45  ;;  %v2123_v19 = vpop.permute.xlu2 %2122  ;;  %vm1090_vm1 = vcmask 244736   ;;  %s3644_s24 = smov 95  }
 0x1c5   : > { %v840_v39 = vpop.permute.xlu0 %839  ;;  %v1079_v42 = vmul.f32 %v1074_v48, %v2932_v11  ;;  %v2125_v35 = vunpack.i.h.bf16 %v2123_v19  ;;  %v2124_v61 = vunpack.i.l.bf16 %v2123_v19 }
 0x1c6   : > { %v3046_v60 = vpop.permute.xlu1 %872  ;;  %v843_v33 = vsel %vm543_vm4, %v2983_v38, %v840_v39  ;;  %v844_v58 = vsel %vm543_vm4, %v840_v39, %v842_v46  ;;  %v991_v38 = vadd.f32 %v985_v62, %v2845_v17 }
 0x1c7   : > { %v3054_v3 = vadd.f32 %v844_v58, %v829_v4  ;;  %v1110_v4 = vmul.f32 %v2070_v59, %v2845_v17 }
 0x1cb   : > { %901 = vrot.lane.b32.xlu0 %v894_v20, %s2513_s22  ;;  %v828_v20 = vadd.f32 %v2972_v37, %v2799_v40 }
 0x1cc   : > { %899 = vrot.lane.b32.xlu2 %v893_v44, %s2513_s22 }
 0x1cd   : > { %v1001_v46 = vpop.permute.xlu0 %1000  ;;  %v848_v44 = vadd.f32 %v843_v33, %v828_v20  ;;  %v713_v33 = vsel %vm588_vm11, %v2124_v61, %v2125_v35 }
 0x1ce   : > { %v3062_v32 = vpop.permute.xlu1 %1023  ;;  %v1005_v27 = vsel %vm1004_vm0, %v2992_v0, %v1001_v46  ;;  %v1006_v57 = vsel %vm1004_vm0, %v1001_v46, %v1003_v36  ;;  %vm921_vm0 = vcmask 130048  }
 0x1cf   : > { %v3065_v21 = vadd.f32 %v1005_v27, %v990_v41  ;;  %v1012_v22 = vadd.f32 %v1006_v57, %v991_v38  ;;  %v2140_v27 = vunpack.i.h.bf16 %v3032_v23  ;;  %v2139_v57 = vunpack.i.l.bf16 %v3032_v23 }
 0x1d1   : > { %v1033_v0 = vadd.f32 %v3062_v32, %v1012_v22 }
 0x1d3   : > { %1042 = vrot.lane.b32.xlu0 %v1035_v10, %s2509_s28  ;;  %v716_v10 = vsel %vm588_vm11, %v2139_v57, %v2140_v27 }
 0x1d4   : > { %1040 = vrot.lane.b32.xlu2 %v1034_v29, %s2509_s28  ;;  %v714_v29 = vsel %vm588_vm11, %v2125_v35, %v3005_v28 }
 0x1d6   : > { %v3073_v5 = vpop.permute.xlu1 %903 }
 0x1db   : > { %917 = vrot.lane.b32.xlu0 %v2932_v11, %s2520_s14 }
 0x1dc   : > { %915 = vrot.lane.b32.xlu2 %v2799_v40, %s2520_s14  ;;  %s1928_s14 = sshll.u32 %s2596_s13, 3 }
 0x1de   : > { %v3080_v36 = vpop.permute.xlu1 %1044 }
 0x1df   : > { %v3083_v62 = vadd.f32 %v3080_v36, %v1033_v0 }
 0x1e3   : > { %1060 = vrot.lane.b32.xlu0 %v1055_v51, %s2500_s16 }
 0x1e4   : > { %1058 = vrot.lane.b32.xlu2 %v1054_v31, %s2500_s16 }
 0x1eb   : > { %934 = vrot.lane.b32.xlu0 %v2845_v17, %s2514_s21 }
 0x1ec   : > { %932 = vrot.lane.b32.xlu2 %v2932_v11, %s2514_s21 }
 0x1f3   : > { %1088 = vrot.lane.b32.xlu0 %v1080_v43, %s2521_s23 }
 0x1f4   : > { %1086 = vrot.lane.b32.xlu2 %v1079_v42, %s2521_s23  ;;  %v3143_v42 = vpop.permute.xlu1 %919  ;;  %s357_s23 = sand.u32 1, %s2481_s10  }
 0x1f5   : > { %s1796_s13 = scalar_lea.sflag [#allocation4], %s357_s23 }
 0x1fb   : > { %948 = vrot.lane.b32.xlu0 %v2845_v17, %s2506_s25 }
 0x1fc   : > { %946 = vrot.lane.b32.xlu2 %v2932_v11, %s2506_s25  ;;  %s1901_s25 = sshll.u32 %s357_s23, 3 }
 0x203   : > { %1118 = vrot.lane.b32.xlu0 %v1110_v4, %s2522_s17 }
 0x204   : > { %1116 = vrot.lane.b32.xlu2 %v1109_v50, %s2522_s17 }
 0x20b   : > { %962 = vrot.lane.b32.xlu0 %v2845_v17, %s2510_s29 }
 0x20c   : > { %960 = vrot.lane.b32.xlu2 %v2932_v11, %s2510_s29 }
 0x20e   : > { %v2128_v39 = vpop.permute.xlu2 %2127 }
 0x20f   : > { %v2130_v58 = vunpack.i.h.bf16 %v2128_v39  ;;  %v2129_v49 = vunpack.i.l.bf16 %v2128_v39 }
 0x211   : > { %v717_v59 = vsel %vm588_vm11, %v2129_v49, %v2130_v58 }
 0x212   : > { %752 = vmatpush.msra.mxu0 %v717_v59 }
 0x213   : > { %1148 = vrot.lane.b32.xlu0 %v1140_v56, %s2508_s27 }
 0x214   : > { %1146 = vrot.lane.b32.xlu2 %v1139_v63, %s2508_s27 }
 0x216   : > { %v869_v41 = vpop.permute.xlu2 %868 }
 0x217   : > { %v3127_v38 = vadd.f32 %v869_v41, %v848_v44 }
 0x21e   : > { %v1020_v46 = vpop.permute.xlu2 %1019 }
 0x225   : > { %v2133_v17 = vpop.permute.xlu0 %2132 }
 0x226   : > { %v2135_v2 = vunpack.i.h.bf16 %v2133_v17  ;;  %v2134_v11 = vunpack.i.l.bf16 %v2133_v17  ;;  %v900_v22 = vpop.permute.xlu2 %899 }
 0x228   : > { %v715_v40 = vsel %vm588_vm11, %v2135_v2, %v2139_v57  ;;  %v718_v37 = vsel %vm588_vm11, %v2130_v58, %v2134_v11  ;;  %v931_v58 = vpop.permute.xlu1 %930  ;;  %v665_v57 = vld [vmem:[%s3624_s2] sm:$0xf]  ;;  %v2523_v2 = vmov 0  }
 0x229   : > { %753 = vmatpush.msra.mxu0 %v715_v40  ;;  %772 = vmatpush.msra.mxu1 %v718_v37 }
 0x22a   : > { %2141 = vset.pattern.permute.xlu1 %v2523_v2  ;;  %2143 = vset.pattern.permute.xlu0 %v2523_v2 }
 0x22b   : > { %754 = vmatpush.msra.mxu0 %v713_v33  ;;  %773 = vmatpush.msra.mxu1 %v716_v10 }
 0x22c   : > { %668 = vperm.xlu1 %2141, %v665_v57   ;;  %2142 = vset.pattern.permute.xlu2 %v2523_v2 }
 0x22d   : > { %v871_v23 = vpop.permute.xlu0 %870  ;;  %774 = vmatpush.msra.mxu1 %v714_v29 }
 0x22e   : > { %v875_v0 = vsel %vm874_vm3, %v869_v41, %v871_v23  ;;  %v876_v51 = vsel %vm874_vm3, %v871_v23, %v3046_v60  ;;  %v1041_v31 = vpop.permute.xlu2 %1040  ;;  %vm1213_vm3 = vcmask 97280  }
 0x22f   : > { %v881_v45 = vadd.f32 %v875_v0, %v3054_v3  ;;  %v882_v48 = vadd.f32 %v876_v51, %v3025_v26 }
 0x230   : > { %v3150_v63 = vpop.permute.xlu1 %1084 }
 0x231   : > { %v3141_v43 = vadd.f32 %v3073_v5, %v882_v48 }
 0x235   : > { %v1022_v4 = vpop.permute.xlu0 %1021 }
 0x236   : > { %v1026_v50 = vsel %vm1025_vm13, %v1020_v46, %v1022_v4  ;;  %v1027_v28 = vsel %vm1025_vm13, %v1022_v4, %v3062_v32  ;;  %v916_v19 = vpop.permute.xlu2 %915  ;;  %vm1215_vm13 = vcmask 93184  }
 0x237   : > { %v1031_v39 = vadd.f32 %v1026_v50, %v2996_v30  ;;  %v1032_v60 = vadd.f32 %v1027_v28, %v3065_v21 }
 0x238   : > { %v945_v35 = vpop.permute.xlu1 %944 }
 0x23d   : > { %v902_v49 = vpop.permute.xlu0 %901 }
 0x23e   : > { %v906_v26 = vsel %vm3639_vm8, %v902_v49, %v3073_v5  ;;  %v1059_v3 = vpop.permute.xlu2 %1058  ;;  %v664_v5 = vld [vmem:[%s3623_s1] sm:$0xf]  ;;  %v905_v11 = vsel %vm3639_vm8, %v900_v22, %v902_v49 }
 0x23f   : > { %v911_v56 = vadd.f32 %v906_v26, %v881_v45  ;;  %1913 = vmatmul.msk.f32.vlgmr.msra.gmra.mxu0 %vm731_vm14, %v664_v5  ;;  %1915 = vmatmul.msk.f32.vlgmr.msra.gmra.mxu1 %vm731_vm14, %v664_v5  ;;  %v910_v37 = vadd.f32 %v905_v11, %v3127_v38  ;;  %vm1120_vm14 = vcmask 801792  }
 0x240   : > { %v1115_v40 = vpop.permute.xlu1 %1114 }
 0x241   : > { %v927_v23 = vadd.f32 %v916_v19, %v910_v37 }
 0x245   : > { %v1043_v59 = vpop.permute.xlu0 %1042 }
 0x246   : > { %v1047_v20 = vsel %vm588_vm11, %v1043_v59, %v3080_v36  ;;  %v933_v44 = vpop.permute.xlu2 %932  ;;  %v1046_v0 = vsel %vm588_vm11, %v1041_v31, %v1043_v59 }
 0x247   : > { %v1052_v32 = vadd.f32 %v1047_v20, %v1032_v60  ;;  %v936_v29 = vsel %vm3638_vm10, %v931_v58, %v933_v44  ;;  %v1051_v48 = vadd.f32 %v1046_v0, %v1031_v39 }
 0x248   : > { %v941_v51 = vadd.f32 %v936_v29, %v927_v23  ;;  %v959_v45 = vpop.permute.xlu1 %958 }
 0x249   : > { %v1066_v60 = vadd.f32 %v1059_v3, %v1051_v48 }
 0x24a   : > { %v955_v50 = vadd.f32 %v945_v35, %v941_v51 }
 0x24d   : > { %v918_v41 = vpop.permute.xlu0 %917 }
 0x24e   : > { %v922_v30 = vsel %vm921_vm0, %v916_v19, %v918_v41  ;;  %v3155_v21 = vpop.permute.xlu2 %1086 }
 0x24f   : > { %v928_v46 = vadd.f32 %v922_v30, %v911_v56  ;;  %v1096_v56 = vadd.f32 %v3150_v63, %v1066_v60 }
 0x250   : > { %v1145_v31 = vpop.permute.xlu1 %1144 }
 0x255   : > { %v1061_v61 = vpop.permute.xlu0 %1060 }
 0x256   : > { %v1062_v36 = vsel %vm449_vm9, %v1059_v3, %v1061_v61  ;;  %v947_v17 = vpop.permute.xlu2 %946  ;;  %v923_v3 = vsel %vm921_vm0, %v918_v41, %v3143_v42 }
 0x257   : > { %v1067_v27 = vadd.f32 %v1062_v36, %v1052_v32  ;;  %v929_v36 = vadd.f32 %v923_v3, %v3141_v43 }
 0x25d   : > { %v935_v33 = vpop.permute.xlu0 %934 }
 0x25e   : > { %v1117_v10 = vpop.permute.xlu2 %1116  ;;  %v937_v5 = vsel %vm3638_vm10, %v933_v44, %v935_v33  ;;  %v943_v11 = vadd.f32 %v935_v33, %v929_v36  ;;  %v1068_v44 = vadd.f32 %v1061_v61, %v3083_v62 }
 0x25f   : > { %v1121_v38 = vsel %vm1120_vm14, %v1115_v40, %v1117_v10  ;;  %v942_v57 = vadd.f32 %v937_v5, %v928_v46  ;;  %v950_v40 = vsel %vm857_vm15, %v945_v35, %v947_v17  ;;  %v1091_v46 = vsel %vm1090_vm1, %v3150_v63, %v3155_v21 }
 0x260   : > { %v1126_v58 = vadd.f32 %v1121_v38, %v1096_v56 }
 0x261   : > { %v956_v23 = vadd.f32 %v950_v40, %v942_v57 }
 0x265   : > { %v1089_v4 = vpop.permute.xlu0 %1088 }
 0x266   : > { %v961_v28 = vpop.permute.xlu2 %960  ;;  %v1092_v42 = vsel %vm1090_vm1, %v3155_v21, %v1089_v4 }
 0x267   : > { %v964_v22 = vsel %vm621_vm7, %v959_v45, %v961_v28  ;;  %v1098_v33 = vadd.f32 %v1092_v42, %v1068_v44  ;;  %v1209_v44 = vld [vmem:[#allocation2] sm:$0xff] }
 0x268   : > { %v969_v49 = vadd.f32 %v964_v22, %v955_v50 }
 0x26a   : > { %v1158_v26 = vperm.slane %v969_v49, 0 }
 0x26c   : > { %1167 = vrot.lane.b32.xlu2 %v1158_v26, %s2508_s27 }
 0x26d   : > { %v949_v19 = vpop.permute.xlu0 %948 }
 0x26e   : > { %v1147_v59 = vpop.permute.xlu2 %1146  ;;  %v951_v2 = vsel %vm857_vm15, %v947_v17, %v949_v19  ;;  %v1097_v17 = vadd.f32 %v1091_v46, %v1067_v27 }
 0x26f   : > { %v1150_v39 = vsel %vm648_vm2, %v1145_v31, %v1147_v59  ;;  %v957_v37 = vadd.f32 %v951_v2, %v943_v11  ;;  %v2524_v11 = vmov 256.0  }
 0x270   : > { %v1155_v20 = vadd.f32 %v1150_v39, %v1126_v58  ;;  %2349 = vrcp.f32 %v2524_v11 }
 0x272   : > { %v1161_v32 = vperm.slane %v1155_v20, 0 }
 0x274   : > { %1180 = vrot.lane.b32.xlu2 %v1161_v32, %s2508_s27 }
 0x275   : > { %v1119_v30 = vpop.permute.xlu0 %1118 }
 0x276   : > { %v1122_v35 = vsel %vm1120_vm14, %v1117_v10, %v1119_v30  ;;  %v1128_v48 = vadd.f32 %v1119_v30, %v1098_v33  ;;  %v2350_v40 = vpop.eup %2349 }
 0x277   : > { %v1127_v50 = vadd.f32 %v1122_v35, %v1097_v17  ;;  %vm1205_vm15 = vweird.f32 %v2350_v40 }
 0x27d   : > { %v963_v29 = vpop.permute.xlu0 %962 }
 0x27e   : > { %v965_v0 = vsel %vm621_vm7, %v961_v28, %v963_v29  ;;  %v971_v51 = vadd.f32 %v963_v29, %v957_v37  ;;  %v1201_v37 = vmul.f32 256.0, %v2350_v40 }
 0x27f   : > { %v970_v41 = vadd.f32 %v965_v0, %v956_v23 }
 0x280   : > { %v1160_v45 = vperm.slane %v971_v51, 0  ;;  %v1202_v29 = vsub.f32 1.0, %v1201_v37 }
 0x281   : > { %v1159_v43 = vperm.slane %v970_v41, 0 }
 0x282   : > { %1171 = vrot.lane.b32.xlu1 %v1160_v45, %s2508_s27  ;;  %v1203_v23 = vmul.f32 %v2350_v40, %v1202_v29  ;;  %v1210_v45 = vld [vmem:[#allocation2 + $0x8] sm:$0xf] }
 0x283   : > { %1169 = vrot.lane.b32.xlu0 %v1159_v43, %s2508_s27 }
 0x284   : > { %v1204_v0 = vadd.f32 %v2350_v40, %v1203_v23 }
 0x285   : > { %v1149_v28 = vpop.permute.xlu0 %1148 }
 0x286   : > { %v1151_v4 = vsel %vm648_vm2, %v1147_v59, %v1149_v28  ;;  %v1157_v22 = vadd.f32 %v1149_v28, %v1128_v48  ;;  %v1206_v51 = vsel %vm1205_vm15, %v2350_v40, %v1204_v0 }
 0x287   : > { %v1156_v62 = vadd.f32 %v1151_v4, %v1127_v50 }
 0x288   : > { %v1163_v61 = vperm.slane %v1157_v22, 0 }
 0x289   : > { %v1162_v60 = vperm.slane %v1156_v62, 0 }
 0x28a   : > { %1184 = vrot.lane.b32.xlu1 %v1163_v61, %s2508_s27 }
 0x28b   : > { %1182 = vrot.lane.b32.xlu0 %v1162_v60, %s2508_s27  ;;  %v1224_v60 = vld [vmem:[%s3626_s4] sm:$0x1] }
 0x29e   : > { %v669_v63 = vpop.permute.xlu1 %668 }
 0x2bc   : > { %v756_v21 = vpop.f32.mrf.mxu0  ;;  %v776_v10 = vpop.f32.mrf.mxu1 }
 0x2bd   : > { %v757_v26 = vadd.f32 %v756_v21, %v669_v63  ;;  %v777_v38 = vadd.f32 %v776_v10, %v669_v63 }
 0x2c6   : > { %v1168_v49 = vpop.permute.xlu2 %1167 }
 0x2ce   : > { %v1181_v32 = vpop.permute.xlu2 %1180 }
 0x2f4   : > { %v1172_v27 = vpop.permute.xlu1 %1171 }
 0x2f5   : > { %v1170_v56 = vpop.permute.xlu0 %1169 }
 0x2f6   : > { %v1173_v19 = vsel %vm648_vm2, %v1168_v49, %v1170_v56  ;;  %v1174_v31 = vsel %vm648_vm2, %v1170_v56, %v1172_v27  ;;  %v1228_v49 = vld [vmem:[#allocation5 + $0x8] sm:$0xf]  ;;  %v1227_v27 = vld [vmem:[#allocation5] sm:$0xff] }
 0x2f7   : > { %v3196_v58 = vsel %vm651_vm6, %v757_v26, %v1173_v19  ;;  %v3199_v59 = vsel %vm651_vm6, %v777_v38, %v1174_v31 }
 0x2f8   : > { %v1192_v39 = vadd.f32 %v3199_v59, %v3196_v58 }
 0x2fa   : > { %1193 = vadd.xlane.f32.xlu2 %v1192_v39  ;;  %v1239_v39 = vld [vmem:[%s3628_s6 + $0x8] sm:$0xf] }
 0x2fc   : > { %v1185_v20 = vpop.permute.xlu1 %1184 }
 0x2fd   : > { %v1183_v3 = vpop.permute.xlu0 %1182 }
 0x2fe   : > { %v3204_v30 = vsel %vm648_vm2, %v1181_v32, %v1183_v3  ;;  %v3207_v5 = vsel %vm648_vm2, %v1183_v3, %v1185_v20  ;;  %v1238_v20 = vld [vmem:[%s3628_s6] sm:$0xff] }
 0x2ff   : > { %v1195_v36 = vsel %vm651_vm6, %v3204_v30, 0.0  ;;  %v1196_v57 = vsel %vm651_vm6, %v3207_v5, 0.0 }
 0x300   : > { %v1197_v2 = vadd.f32 %v1196_v57, %v1195_v36 }
 0x302   : > { %1198 = vadd.xlane.f32.xlu0 %v1197_v2 }
 0x36d   : > { %v1194_v42 = vpop.xlane.xlu2 %1193 }
 0x36e   : > { %v1207_v41 = vmul.f32 %v1206_v51, %v1194_v42 }
 0x370   : > { %v1211_v46 = vmul.f32 %v1209_v44, %v1207_v41 }
 0x372   : > { %v1214_v17 = vsel %vm1213_vm3, %v1211_v46, 0.0 }
 0x375   : > { %v1199_v43 = vpop.xlane.xlu0 %1198 }
 0x376   : > { %v1208_v33 = vmul.f32 %v1206_v51, %v1199_v43 }
 0x378   : > { %v1212_v35 = vmul.f32 %v1210_v45, %v1208_v33 }
 0x37a   : > { %v1216_v48 = vsel %vm1215_vm13, %v1212_v35, 0.0 }
 0x37b   : > { %v1217_v50 = vadd.f32 %v1216_v48, %v1214_v17 }
 0x37d   : > { %v1218_v28 = vrot.slane %v1217_v50, 4 }
 0x37f   : > { %v1219_v4 = vadd.f32 %v1218_v28, %v1217_v50 }
 0x381   : > { %v1220_v22 = vrot.slane %v1219_v4, 2 }
 0x383   : > { %v1221_v62 = vadd.f32 %v1220_v22, %v1219_v4 }
 0x385   : > { %v1222_v61 = vrot.slane %v1221_v62, 1 }
 0x387   : > { %v1223_v63 = vadd.f32 %v1222_v61, %v1221_v62 }
 0x389   : > { %v1225_v21 = vadd.f32 %v1224_v60, %v1223_v63 }
 0x38b   : > { %v1226_v10 = vmax.f32 %v1225_v21, 0.0 }
 0x38d   : > { %v1229_v26 = vperm.slane %v1226_v10, 0 }
 0x38f   : > { %v1231_v38 = vmul.f32 %v1229_v26, %v1228_v49  ;;  %v1230_v56 = vmul.f32 %v1229_v26, %v1227_v27 }
 0x391   : > { %v1235_v19 = vsel %vm1215_vm13, %v1231_v38, 0.0  ;;  %v1232_v31 = vsel %vm1213_vm3, %v1230_v56, 0.0 }
 0x392   : > { %1236 = vadd.xlane.f32.xlu1 %v1235_v19  ;;  %1233 = vadd.xlane.f32.xlu2 %v1232_v31 }
 0x405   : > { %v1237_v32 = vpop.xlane.xlu1 %1236  ;;  %v1234_v3 = vpop.xlane.xlu2 %1233 }
 0x406   : > { %v1241_v36 = vadd.f32 %v1239_v39, %v1237_v32  ;;  %v1240_v57 = vadd.f32 %v1238_v20, %v1234_v3 }
 0x408   : > { %v1917_v2 = vmul.f32 -1.442695, %v1241_v36  ;;  %v1916_v11 = vmul.f32 -1.442695, %v1240_v57 }
 0x40a   : > { %2351 = vpow2.f32 %v1917_v2 }
 0x40b   : > { %2353 = vpow2.f32 %v1916_v11 }
 0x410   : > { %v2352_v40 = vpop.eup %2351 }
 0x411   : > { %v2354_v37 = vpop.eup %2353  ;;  %v1249_v29 = vadd.f32 1.0, %v2352_v40 }
 0x412   : > { %v1248_v23 = vadd.f32 1.0, %v2354_v37 }
 0x413   : > { %2355 = vrcp.f32 %v1249_v29  ;;  %v1276_v45 = vand.u32 2147483648, %v1249_v29  ;;  %v1274_v33 = vand.u32 2147483647, %v1249_v29  ;;  %vm1270_vm1 = vweird.f32 %v1249_v29 }
 0x414   : > { %2357 = vrcp.f32 %v1248_v23  ;;  %v1261_v35 = vand.u32 2147483648, %v1248_v23  ;;  %v1259_v48 = vand.u32 2147483647, %v1248_v23  ;;  %vm1255_vm3 = vweird.f32 %v1248_v23 }
 0x415   : > { %v1277_v28 = vor.u32 1.1754944e-38, %v1276_v45  ;;  %vm1275_vm13 = vcmp.eq.f32.partialorder %v1274_v33, 8.507059e+37 }
 0x416   : > { %v1262_v62 = vor.u32 1.1754944e-38, %v1261_v35  ;;  %vm1260_vm8 = vcmp.eq.f32.partialorder %v1259_v48, 8.507059e+37 }
 0x419   : > { %v2356_v0 = vpop.eup %2355 }
 0x41a   : > { %v2358_v51 = vpop.eup %2357  ;;  %v1266_v42 = vmul.f32 %v2356_v0, %v1249_v29  ;;  %vm1271_vm0 = vweird.f32 %v2356_v0 }
 0x41b   : > { %v1251_v41 = vmul.f32 %v2358_v51, %v1248_v23  ;;  %vm1256_vm14 = vweird.f32 %v2358_v51  ;;  %vm1272_vm15 = vmor %vm1270_vm1, %vm1271_vm0 }
 0x41c   : > { %v1267_v44 = vsub.f32 1.0, %v1266_v42  ;;  %vm1257_vm10 = vmor %vm1255_vm3, %vm1256_vm14 }
 0x41d   : > { %v1252_v43 = vsub.f32 1.0, %v1251_v41 }
 0x41e   : > { %v1268_v46 = vmul.f32 %v2356_v0, %v1267_v44 }
 0x41f   : > { %v1253_v17 = vmul.f32 %v2358_v51, %v1252_v43 }
 0x420   : > { %v1269_v50 = vadd.f32 %v2356_v0, %v1268_v46 }
 0x421   : > { %v1254_v4 = vadd.f32 %v2358_v51, %v1253_v17 }
 0x422   : > { %v1273_v22 = vsel %vm1272_vm15, %v2356_v0, %v1269_v50 }
 0x423   : > { %v1278_v61 = vsel %vm1275_vm13, %v1277_v28, %v1273_v22  ;;  %v1258_v60 = vsel %vm1257_vm10, %v2358_v51, %v1254_v4 }
 0x424   : > { %1287 = vperm.xlu2 %2142, %v1278_v61   ;;  %v1263_v63 = vsel %vm1260_vm8, %v1262_v62, %v1258_v60  ;;  %vm3649_vm8 = vcmask 916480  }
 0x425   : > { %1282 = vperm.xlu0 %2143, %v1263_v63  }
 0x47e   : > { %v1288_v21 = vpop.permute.xlu2 %1287 }
 0x47f   : > { %v1292_v10 = vmul.f32 %v1288_v21, %v3204_v30  ;;  %v1293_v49 = vmul.f32 %v1288_v21, %v3207_v5 }
 0x481   : > { %v1296_v27 = vmax.f32 %v1292_v10, 0.0  ;;  %v1297_v26 = vmax.f32 %v1293_v49, 0.0 }
 0x483   : > { %1308 = vrot.lane.b32.xlu2 %v1297_v26, %s2500_s16  ;;  %1306 = vrot.lane.b32.xlu1 %v1296_v27, %s2500_s16 }
 0x497   : > { %v1283_v38 = vpop.permute.xlu0 %1282 }
 0x498   : > { %v1290_v56 = vmul.f32 %v1283_v38, %v3196_v58  ;;  %v1291_v19 = vmul.f32 %v1283_v38, %v3199_v59 }
 0x49a   : > { %v1294_v31 = vmax.f32 %v1290_v56, 0.0  ;;  %v1295_v39 = vmax.f32 %v1291_v19, 0.0 }
 0x49c   : > { %1304 = vrot.lane.b32.xlu2 %v1295_v39, %s2500_s16  ;;  %1302 = vrot.lane.b32.xlu1 %v1294_v31, %s2500_s16  ;;  %s3643_s16 = smov 127  }
 0x4dd   : > { %v1309_v30 = vpop.permute.xlu2 %1308 }
 0x4de   : > { %v3235_v5 = vsel %vm449_vm9, %v1309_v30, 0.0 }
 0x4df   : > { %v1339_v40 = vmul.f32 %v2734_v6, %v3235_v5  ;;  %v1369_v48 = vrot.slane %v3235_v5, 4 }
 0x4e1   : > { %v1428_v23 = vrot.slane %v1339_v40, 4 }
 0x4f5   : > { %v1307_v20 = vpop.permute.xlu1 %1306 }
 0x4f6   : > { %v1305_v32 = vpop.permute.xlu2 %1304  ;;  %v3238_v3 = vsel %vm449_vm9, %v1307_v20, %v1309_v30  ;;  %v3241_v36 = vsel %vm449_vm9, 0.0, %v1307_v20  ;;  %v1351_v30 = vmul.f32 %v2698_v52, %v3235_v5 }
 0x4f7   : > { %v3244_v58 = vsel %vm449_vm9, %v1305_v32, 0.0  ;;  %v2144_v59 = vpack.i.bf16 %v3235_v5, %v3238_v3  ;;  %v1331_v57 = vmul.f32 %v2738_v8, %v3241_v36  ;;  %v1367_v17 = vrot.slane %v3238_v3, 4 }
 0x4f8   : > { %v1330_v2 = vmul.f32 %v2736_v7, %v3244_v58  ;;  %v3258_v37 = vmul.f32 %v2734_v6, %v3244_v58  ;;  %v1354_v43 = vmul.f32 %v2703_v54, %v3244_v58  ;;  %v1364_v33 = vrot.slane %v3244_v58, 4 }
 0x4f9   : > { %2145 = vrot.lane.b32.xlu0 %v2144_v59, %s2509_s28  ;;  %v1338_v50 = vmul.f32 %v3238_v3, %v2756_v16  ;;  %v1356_v21 = vmul.f32 %v3238_v3, %v2729_v1  ;;  %v1365_v38 = vrot.slane %v3241_v36, 4  ;;  %v1355_v19 = vmul.f32 %v2691_v47, %v3241_v36 }
 0x4fa   : > { %v2169_v11 = vpack.i.bf16 %v1331_v57, %v1330_v2  ;;  %v1423_v29 = vrot.slane %v3258_v37, 4  ;;  %v1370_v22 = vsel %vm651_vm6, %v1364_v33, %v1369_v48  ;;  %v1342_v59 = vmul.f32 %v2745_v13, %v3244_v58 }
 0x4fb   : > { %v1426_v63 = vrot.slane %v1338_v50, 4  ;;  %v1344_v57 = vmul.f32 %v3238_v3, %v2762_v18  ;;  %v1332_v48 = vmul.f32 %v3238_v3, %v2752_v15 }
 0x4fc   : > { %2170 = vrot.lane.b32.xlu2 %v2169_v11, %s2513_s22  ;;  %v3264_v0 = vsel %vm651_vm6, %v1423_v29, %v1428_v23  ;;  %v1345_v11 = vmul.f32 %v2745_v13, %v3235_v5  ;;  %v1476_v23 = vrot.slane %v1342_v59, 4  ;;  %v1327_v59 = vmul.f32 %v2857_v24, %v3235_v5 }
 0x50e   : > { %v1303_v51 = vpop.permute.xlu1 %1302 }
 0x50f   : > { %v3267_v42 = vsel %vm449_vm9, %v1303_v51, %v1305_v32  ;;  %v3270_v41 = vsel %vm449_vm9, 0.0, %v1303_v51  ;;  %v1349_v51 = vmul.f32 %v2701_v53, %v3241_v36  ;;  %vm3646_vm9 = vcmask 1031168  }
 0x510   : > { %v2154_v44 = vpack.i.bf16 %v3270_v41, %v3244_v58  ;;  %v2149_v6 = vpack.i.bf16 %v3267_v42, %v3241_v36  ;;  %v1353_v45 = vmul.f32 %v3267_v42, %v2729_v1  ;;  %v1363_v46 = vrot.slane %v3267_v42, 4 }
 0x511   : > { %v1362_v28 = vrot.slane %v3270_v41, 4  ;;  %v3294_v62 = vmul.f32 %v3267_v42, %v2756_v16  ;;  %v1352_v16 = vmul.f32 %v2691_v47, %v3270_v41  ;;  %v1328_v26 = vmul.f32 %v2738_v8, %v3270_v41 }
 0x512   : > { %2155 = vrot.lane.b32.xlu1 %v2154_v44, %s2509_s28  ;;  %2150 = vrot.lane.b32.xlu0 %v2149_v6, %s2509_s28  ;;  %v2174_v35 = vpack.i.bf16 %v1354_v43, %v1353_v45  ;;  %v1368_v4 = vsel %vm651_vm6, %v1363_v46, %v1367_v17  ;;  %v1329_v1 = vmul.f32 %v3267_v42, %v2752_v15  ;;  %v1481_v44 = vrot.slane %v1345_v11, 4 }
 0x513   : > { %v3296_v61 = vpack.i.bf16 %v1370_v22, %v1368_v4  ;;  %v1422_v60 = vrot.slane %v3294_v62, 4  ;;  %v2159_v10 = vpack.i.bf16 %v1363_v46, %v1362_v28  ;;  %v1366_v56 = vsel %vm651_vm6, %v1362_v28, %v1365_v38 }
 0x514   : > { %2175 = vrot.lane.b32.xlu2 %v2174_v35, %s2508_s27  ;;  %v2164_v31 = vpack.i.bf16 %v1329_v1, %v1328_v26  ;;  %v2204_v39 = vpack.i.bf16 %v1366_v56, %v1364_v33  ;;  %v1350_v8 = vmul.f32 %v3238_v3, %v2707_v55  ;;  %v1341_v20 = vmul.f32 %v3267_v42, %v2762_v18 }
 0x515   : > { %v1427_v49 = vsel %vm651_vm6, %v1422_v60, %v1426_v63  ;;  %v1357_v47 = vmul.f32 %v2703_v54, %v3235_v5  ;;  %v2219_v2 = vpack.i.bf16 %v1362_v28, %v1366_v56  ;;  %v1347_v54 = vmul.f32 %v3267_v42, %v2707_v55 }
 0x516   : > { %v2244_v27 = vpack.i.bf16 %v3264_v0, %v1427_v49  ;;  %v2179_v32 = vpack.i.bf16 %v1351_v30, %v1350_v8  ;;  %v1475_v40 = vrot.slane %v1341_v20, 4  ;;  %v1479_v0 = vrot.slane %v1344_v57, 4 }
 0x517   : > { %v1340_v6 = vmul.f32 %v2748_v14, %v3270_v41  ;;  %v2189_v45 = vpack.i.bf16 %v1347_v54, %v1349_v51  ;;  %v2184_v43 = vpack.i.bf16 %v1364_v33, %v1363_v46  ;;  %v1482_v13 = vsel %vm651_vm6, %v1476_v23, %v1481_v44 }
 0x518   : > { %v1480_v18 = vsel %vm651_vm6, %v1475_v40, %v1479_v0  ;;  %v1343_v35 = vmul.f32 %v2748_v14, %v3241_v36  ;;  %v1346_v50 = vmul.f32 %v2701_v53, %v3270_v41  ;;  %v1333_v33 = vmul.f32 %v2736_v7, %v3235_v5 }
 0x519   : > { %v2234_v55 = vpack.i.bf16 %v1482_v13, %v1480_v18  ;;  %v1474_v17 = vrot.slane %v1340_v6, 4  ;;  %v1348_v14 = vmul.f32 %v2698_v52, %v3244_v58  ;;  %v1334_v53 = vmul.f32 %v2743_v12, %v3270_v41 }
 0x51a   : > { %1560 = vrot.lane.b32.xlu0 %v1356_v21, %s2508_s27  ;;  %2160 = vrot.lane.b32.xlu1 %v2159_v10, %s3643_s16  ;;  %v1477_v46 = vrot.slane %v1343_v35, 4  ;;  %v2199_v4 = vpack.i.bf16 %v1333_v33, %v1332_v48  ;;  %v1337_v7 = vmul.f32 %v2743_v12, %v3241_v36  ;;  %v2224_v10 = vpack.i.bf16 %v1476_v23, %v1475_v40 }
 0x51b   : > { %v2194_v22 = vpack.i.bf16 %v1346_v50, %v1348_v14  ;;  %v1421_v52 = vrot.slane %v1334_v53, 4  ;;  %v2229_v12 = vpack.i.bf16 %v1423_v29, %v1422_v60  ;;  %v1326_v57 = vmul.f32 %v3238_v3, %v2870_v34 }
 0x51c   : > { %1552 = vrot.lane.b32.xlu2 %v1352_v16, %s2508_s27  ;;  %v1478_v28 = vsel %vm651_vm6, %v1474_v17, %v1477_v46  ;;  %v1424_v15 = vrot.slane %v1337_v7, 4  ;;  %v3410_v54 = vmul.f32 %v2857_v24, %v3244_v58 }
 0x51d   : > { %v2239_v63 = vpack.i.bf16 %v1474_v17, %v1478_v28 }
 0x51e   : > { %v1425_v21 = vsel %vm651_vm6, %v1421_v52, %v1424_v15 }
 0x51f   : > { %v2249_v49 = vpack.i.bf16 %v1421_v52, %v1425_v21 }
 0x522   : > { %1558 = vrot.lane.b32.xlu0 %v1355_v19, %s2508_s27  ;;  %2165 = vrot.lane.b32.xlu1 %v2164_v31, %s2513_s22 }
 0x524   : > { %2205 = vrot.lane.b32.xlu2 %v2204_v39, %s3643_s16 }
 0x52a   : > { %2180 = vrot.lane.b32.xlu0 %v2179_v32, %s2510_s29  ;;  %1562 = vrot.lane.b32.xlu1 %v1357_v47, %s2508_s27  ;;  %s3645_s27 = smov 110  }
 0x52c   : > { %2220 = vrot.lane.b32.xlu2 %v2219_v2, %s3644_s24  ;;  %v1325_v2 = vmul.f32 %v2859_v25, %v3241_v36 }
 0x532   : > { %2190 = vrot.lane.b32.xlu0 %v2189_v45, %s2510_s29  ;;  %2185 = vrot.lane.b32.xlu1 %v2184_v43, %s3644_s24 }
 0x534   : > { %2235 = vrot.lane.b32.xlu2 %v2234_v55, %s3645_s27 }
 0x53a   : > { %2200 = vrot.lane.b32.xlu0 %v2199_v4, %s2513_s22  ;;  %2195 = vrot.lane.b32.xlu1 %v2194_v22, %s2510_s29 }
 0x53c   : > { %2240 = vrot.lane.b32.xlu2 %v2239_v63, %s3645_s27 }
 0x542   : > { %2210 = vrot.lane.b32.xlu0 %v3296_v61, %s3643_s16  ;;  %2215 = vrot.lane.b32.xlu1 %v3296_v61, %s3644_s24  ;;  %s1807_s16 = scalar_lea.hbm %s3631_s9, %s1928_s14  ;;  %s359_s24 = scalar_lea.vmem [#allocation7], %s1901_s25 }
 0x543   : > { %s1811_s29 = sshll.u32 %s1807_s16, 4  ;;  %s2439_s25 = scalar_lea.hbm %s3631_s9, 16  ;;  %s1812_s29 = int_to_ptr.hbm [resolvable:$true] %s1811_s29 }
 0x544   : > { %2245 = vrot.lane.b32.xlu2 %v2244_v27, %s2514_s21  ;;  %s2433_s22 = sshra.s32 %s1812_s29, 4  ;;  %s2434_s22 = int_to_ptr.hbm [resolvable:$true] %s2433_s22 }
 0x545   : > { %p2440_p3 = scmp.lt.s32.totalorder %s2434_s22, %s3631_s9 }
 0x54a   : > { %2225 = vrot.lane.b32.xlu1 %v2224_v10, %s3645_s27  ;;  %s1809_s27 = sshll.u32 %s359_s24, 4  ;;  %s1810_s27 = int_to_ptr.vmem [resolvable:$true] %s1809_s27 }
 0x54c   : > { %2250 = vrot.lane.b32.xlu2 %v2249_v49, %s2514_s21 }
 0x552   : > { %2230 = vrot.lane.b32.xlu1 %v2229_v12, %s2514_s21 }
 0x556   : > { %v3380_v61 = vpop.permute.xlu2 %2170 }
 0x56b   : > { %v3384_v56 = vpop.permute.xlu0 %2145 }
 0x56c   : > { %v2147_v37 = vunpack.i.l.bf16 %v3384_v56 }
 0x56e   : > { %v2176_v16 = vpop.permute.xlu2 %2175 }
 0x56f   : > { %v2178_v27 = vunpack.i.h.bf16 %v2176_v16  ;;  %v2177_v26 = vunpack.i.l.bf16 %v2176_v16 }
 0x571   : > { %v1565_v1 = vsel %vm648_vm2, %v2177_v26, %v2178_v27 }
 0x572   : > { %v2254_v38 = vpack.i.bf16 %v2178_v27, %v1565_v1 }
 0x574   : > { %2255 = vrot.lane.b32.xlu2 %v2254_v38, %s2509_s28 }
 0x576   : > { %v1553_v19 = vpop.permute.xlu2 %1552 }
 0x577   : > { %v1564_v28 = vsel %vm648_vm2, %v1553_v19, %v2177_v26 }
 0x57e   : > { %v3397_v39 = vpop.permute.xlu2 %2205 }
 0x57f   : > { %v2207_v8 = vunpack.i.l.bf16 %v3397_v39 }
 0x581   : > { %v3413_v23 = vsel %vm651_vm6, %v1327_v59, %v2207_v8 }
 0x584   : > { %v3386_v31 = vpop.permute.xlu1 %2155  ;;  %v3388_v62 = vpop.permute.xlu0 %2150 }
 0x585   : > { %v2152_v29 = vunpack.i.l.bf16 %v3388_v62 }
 0x586   : > { %v3425_v44 = vpop.permute.xlu2 %2220 }
 0x587   : > { %v3395_v60 = vsel %vm588_vm11, %v2152_v29, %v2147_v37  ;;  %v2223_v22 = vunpack.i.h.bf16 %v3425_v44 }
 0x58c   : > { %v1561_v30 = vpop.permute.xlu0 %1560  ;;  %v2161_v20 = vpop.permute.xlu1 %2160 }
 0x58d   : > { %v2163_v32 = vunpack.i.h.bf16 %v2161_v20  ;;  %v2162_v47 = vunpack.i.l.bf16 %v2161_v20  ;;  %v2172_v20 = vunpack.i.l.bf16 %v3380_v61 }
 0x58e   : > { %v3436_v55 = vpop.permute.xlu2 %2235 }
 0x58f   : > { %v1383_v11 = vsel %vm543_vm4, %v2162_v47, %v2163_v32  ;;  %v1384_v40 = vsel %vm543_vm4, %v2163_v32, %v2207_v8  ;;  %v2238_v52 = vunpack.i.h.bf16 %v3436_v55  ;;  %v2237_v15 = vunpack.i.l.bf16 %v3436_v55 }
 0x590   : > { %v3416_v0 = vsel %vm651_vm6, %v1326_v57, %v1384_v40  ;;  %v3419_v5 = vsel %vm651_vm6, %v1325_v2, %v1383_v11  ;;  %v2157_v32 = vunpack.i.l.bf16 %v3386_v31  ;;  %v2153_v47 = vunpack.i.h.bf16 %v3388_v62 }
 0x591   : > { %v2319_v3 = vpack.i.bf16 %v3413_v23, %v3416_v0  ;;  %v2344_v36 = vpack.i.bf16 %v3419_v5, %v3410_v54  ;;  %v1498_v38 = vsel %vm606_vm12, %v2237_v15, %v2238_v52 }
 0x592   : > { %v1462_v62 = vsel %vm588_vm11, %v2153_v47, %v2157_v32 }
 0x594   : > { %v1559_v51 = vpop.permute.xlu0 %1558  ;;  %v2166_v18 = vpop.permute.xlu1 %2165 }
 0x595   : > { %v1566_v50 = vsel %vm648_vm2, %v1559_v51, %v1561_v30  ;;  %v2168_v19 = vunpack.i.h.bf16 %v2166_v18  ;;  %v2167_v8 = vunpack.i.l.bf16 %v2166_v18 }
 0x596   : > { %v3455_v27 = vpop.permute.xlu2 %2240 }
 0x597   : > { %v1409_v11 = vsel %vm3646_vm9, %v2168_v19, %v2172_v20 }
 0x59c   : > { %v3427_v24 = vpop.permute.xlu0 %2180  ;;  %v1563_v58 = vpop.permute.xlu1 %1562 }
 0x59d   : > { %1684 = vrot.lane.b32.xlu1 %v1563_v58, %s2509_s28  ;;  %v1567_v6 = vsel %vm648_vm2, %v1561_v30, %v1563_v58  ;;  %v2183_v45 = vunpack.i.h.bf16 %v3427_v24  ;;  %v2182_v43 = vunpack.i.l.bf16 %v3427_v24  ;;  %v2242_v30 = vunpack.i.l.bf16 %v3455_v27  ;;  %vm3647_vm2 = vmmov %vm3646_vm9 }
 0x59e   : > { %1682 = vrot.lane.b32.xlu0 %v1567_v6, %s2509_s28  ;;  %v1408_v40 = vsel %vm3647_vm2, %v2167_v8, %v2168_v19  ;;  %v2264_v58 = vpack.i.bf16 %v2172_v20, %v1409_v11  ;;  %vm3652_vm0 = vmmov %vm3647_vm2 }
 0x59f   : > { %v1523_v46 = vsel %vm621_vm7, %v2182_v43, %v2183_v45  ;;  %v1497_v51 = vsel %vm606_vm12, %v2242_v30, %v2237_v15 }
 0x5a4   : > { %v3434_v13 = vpop.permute.xlu0 %2190  ;;  %v2186_v35 = vpop.permute.xlu1 %2185 }
 0x5a5   : > { %v2188_v17 = vunpack.i.h.bf16 %v2186_v35  ;;  %v2187_v48 = vunpack.i.l.bf16 %v2186_v35  ;;  %v2192_v33 = vunpack.i.l.bf16 %v3434_v13  ;;  %v2193_v49 = vunpack.i.h.bf16 %v3434_v13  ;;  %v2246_v35 = vpop.permute.xlu2 %2245 }
 0x5a6   : > { %1680 = vrot.lane.b32.xlu0 %v1566_v50, %s2509_s28  ;;  %v2222_v13 = vunpack.i.l.bf16 %v3425_v44  ;;  %v2248_v30 = vunpack.i.h.bf16 %v2246_v35 }
 0x5a7   : > { %v1540_v14 = vsel %vm633_vm5, %v2187_v48, %v2188_v17  ;;  %v1522_v53 = vsel %vm621_vm7, %v2192_v33, %v2182_v43  ;;  %v1539_v7 = vsel %vm633_vm5, %v2223_v22, %v2187_v48  ;;  %v2304_v43 = vpack.i.bf16 %v1462_v62, %v1497_v51 }
 0x5a8   : > { %v1578_v4 = vsel %vm651_vm6, %v1523_v46, %v1540_v14  ;;  %v1577_v16 = vsel %vm651_vm6, %v1522_v53, %v1539_v7  ;;  %v2148_v22 = vunpack.i.h.bf16 %v3384_v56  ;;  %v2173_v51 = vunpack.i.h.bf16 %v3380_v61 }
 0x5a9   : > { %v2279_v63 = vpack.i.bf16 %v1578_v4, %v1564_v28  ;;  %v2294_v29 = vpack.i.bf16 %v1498_v38, %v1577_v16  ;;  %v1579_v28 = vsel %vm651_vm6, %v2183_v45, %v2188_v17  ;;  %v2158_v45 = vunpack.i.h.bf16 %v3386_v31 }
 0x5ab   : > { %2280 = vrot.lane.b32.xlu2 %v2279_v63, %s2509_s28  ;;  %v1461_v8 = vsel %vm588_vm11, %v2158_v45, %v2153_v47 }
 0x5ac   : > { %v3451_v21 = vpop.permute.xlu0 %2200  ;;  %v2196_v10 = vpop.permute.xlu1 %2195 }
 0x5ad   : > { %v2197_v12 = vunpack.i.l.bf16 %v2196_v10  ;;  %v2198_v63 = vunpack.i.h.bf16 %v2196_v10  ;;  %v2203_v7 = vunpack.i.h.bf16 %v3451_v21  ;;  %v2202_v15 = vunpack.i.l.bf16 %v3451_v21  ;;  %v2251_v19 = vpop.permute.xlu2 %2250 }
 0x5ae   : > { %v2253_v11 = vunpack.i.h.bf16 %v2251_v19 }
 0x5af   : > { %v1521_v26 = vsel %vm621_vm7, %v2193_v49, %v2197_v12  ;;  %v1520_v10 = vsel %vm621_vm7, %v2198_v63, %v2193_v49  ;;  %vm3650_vm7 = vmmov %vm3649_vm8 }
 0x5b0   : > { %v2259_v1 = vpack.i.bf16 %v2197_v12, %v1521_v26  ;;  %v1464_v12 = vsel %vm588_vm11, %v2147_v37, %v2148_v22  ;;  %v2289_v37 = vpack.i.bf16 %v1520_v10, %v2238_v52  ;;  %vm3651_vm10 = vmmov %vm3650_vm7 }
 0x5b2   : > { %2260 = vrot.lane.b32.xlu1 %v2259_v1, %s2509_s28 }
 0x5b3   : > { %2295 = vrot.lane.b32.xlu2 %v2294_v29, %s2509_s28  ;;  %v2243_v29 = vunpack.i.h.bf16 %v3455_v27 }
 0x5b4   : > { %v3467_v59 = vpop.permute.xlu0 %2210  ;;  %v2216_v57 = vpop.permute.xlu1 %2215 }
 0x5b5   : > { %v2213_v2 = vunpack.i.h.bf16 %v3467_v59  ;;  %v2217_v24 = vunpack.i.l.bf16 %v2216_v57  ;;  %v2218_v6 = vunpack.i.h.bf16 %v2216_v57  ;;  %v2247_v57 = vunpack.i.l.bf16 %v2246_v35 }
 0x5b6   : > { %v2212_v52 = vunpack.i.l.bf16 %v3467_v59  ;;  %v1323_v59 = vmul.f32 %v3267_v42, %v2870_v34 }
 0x5b7   : > { %v2269_v18 = vpack.i.bf16 %v1408_v40, %v2213_v2  ;;  %v1541_v50 = vsel %vm633_vm5, %v2222_v13, %v2217_v24  ;;  %v1542_v46 = vsel %vm633_vm5, %v2217_v24, %v2218_v6  ;;  %vm3648_vm5 = vmmov %vm3647_vm2  ;;  %v1410_v24 = vsel %vm3652_vm0, %v2173_v51, %v2202_v15 }
 0x5b8   : > { %v2284_v4 = vpack.i.bf16 %v1541_v50, %v1579_v28  ;;  %v2274_v53 = vpack.i.bf16 %v2218_v6, %v1542_v46  ;;  %v1411_v21 = vsel %vm3648_vm5, %v2202_v15, %v2203_v7  ;;  %v1386_v61 = vsel %vm543_vm4, %v2212_v52, %v2213_v2  ;;  %v1581_v50 = vld [vmem:[%s3630_s8] sm:$0xf] }
 0x5b9   : > { %2270 = vrot.lane.b32.xlu0 %v2269_v18, %s2509_s28  ;;  %v1445_v18 = vsel %vm3651_vm10, %v2247_v57, %v2248_v30  ;;  %v2252_v13 = vunpack.i.l.bf16 %v2251_v19 }
 0x5ba   : > { %2265 = vrot.lane.b32.xlu1 %v2264_v58, %s2509_s28  ;;  %v2314_v6 = vpack.i.bf16 %v2248_v30, %v1445_v18 }
 0x5bb   : > { %2305 = vrot.lane.b32.xlu2 %v2304_v43, %s2509_s28 }
 0x5bc   : > { %v2226_v48 = vpop.permute.xlu1 %2225 }
 0x5bd   : > { %v2228_v33 = vunpack.i.h.bf16 %v2226_v48  ;;  %v2227_v14 = vunpack.i.l.bf16 %v2226_v48 }
 0x5bf   : > { %v1496_v44 = vsel %vm606_vm12, %v2227_v14, %v2228_v33  ;;  %v1576_v38 = vsel %vm651_vm6, %v2148_v22, %v2228_v33  ;;  %v1495_v40 = vsel %vm606_vm12, %v2243_v29, %v2227_v14  ;;  %vm3653_vm12 = vmmov %vm3650_vm7 }
 0x5c0   : > { %v1575_v1 = vsel %vm651_vm6, %v1464_v12, %v1496_v44  ;;  %v1574_v47 = vsel %vm651_vm6, %v3395_v60, %v1495_v40  ;;  %v2208_v60 = vunpack.i.h.bf16 %v3397_v39  ;;  %v1322_v39 = vmul.f32 %v2859_v25, %v3270_v41 }
 0x5c1   : > { %2285 = vrot.lane.b32.xlu0 %v2284_v4, %s2509_s28  ;;  %v2299_v49 = vpack.i.bf16 %v1576_v38, %v1575_v1  ;;  %v2309_v62 = vpack.i.bf16 %v1574_v47, %v2157_v32  ;;  %v1444_v32 = vsel %vm3653_vm12, %v2252_v13, %v2247_v57 }
 0x5c2   : > { %2275 = vrot.lane.b32.xlu1 %v2274_v53, %s2509_s28  ;;  %v1385_v31 = vsel %vm543_vm4, %v2208_v60, %v2212_v52  ;;  %vm1740_vm4 = vcmask 883712  }
 0x5c3   : > { %v2339_v48 = vpack.i.bf16 %v1323_v59, %v1385_v31 }
 0x5c4   : > { %v2231_v17 = vpop.permute.xlu1 %2230 }
 0x5c5   : > { %v2233_v16 = vunpack.i.h.bf16 %v2231_v17  ;;  %v2232_v26 = vunpack.i.l.bf16 %v2231_v17 }
 0x5c7   : > { %v1443_v56 = vsel %vm3649_vm8, %v2232_v26, %v2233_v16  ;;  %v1442_v55 = vsel %vm3650_vm7, %v2253_v11, %v2232_v26  ;;  %v1573_v35 = vsel %vm651_vm6, %v2203_v7, %v2233_v16 }
 0x5c8   : > { %v1572_v20 = vsel %vm651_vm6, %v1411_v21, %v1443_v56  ;;  %v1571_v58 = vsel %vm651_vm6, %v1410_v24, %v1442_v55  ;;  %v2329_v2 = vpack.i.bf16 %v1444_v32, %v1573_v35 }
 0x5c9   : > { %2290 = vrot.lane.b32.xlu0 %v2289_v37, %s2509_s28  ;;  %v2324_v27 = vpack.i.bf16 %v1572_v20, %v1461_v8  ;;  %v2334_v43 = vpack.i.bf16 %v1386_v61, %v1571_v58 }
 0x5ca   : > { %2300 = vrot.lane.b32.xlu1 %v2299_v49, %s2509_s28 }
 0x5cb   : > { %2325 = vrot.lane.b32.xlu2 %v2324_v27, %s2509_s28 }
 0x5ce   : > { %v2256_v34 = vpop.permute.xlu2 %2255 }
 0x5cf   : > { %v2258_v42 = vunpack.i.h.bf16 %v2256_v34  ;;  %v2257_v23 = vunpack.i.l.bf16 %v2256_v34 }
 0x5d1   : > { %2310 = vrot.lane.b32.xlu0 %v2309_v62, %s2509_s28  ;;  %v1711_v25 = vsel %vm588_vm11, %v2257_v23, %v2258_v42 }
 0x5d2   : > { %2315 = vrot.lane.b32.xlu1 %v2314_v6, %s2509_s28 }
 0x5d3   : > { %2335 = vrot.lane.b32.xlu2 %v2334_v43, %s2509_s28 }
 0x5d9   : > { %2330 = vrot.lane.b32.xlu0 %v2329_v2, %s2509_s28 }
 0x5da   : > { %2320 = vrot.lane.b32.xlu1 %v2319_v3, %s2509_s28 }
 0x5db   : > { %2340 = vrot.lane.b32.xlu2 %v2339_v48, %s2509_s28 }
 0x5e1   : > { %2345 = vrot.lane.b32.xlu0 %v2344_v36, %s2509_s28 }
 0x5e2   : > { %1602 = vrot.lane.b32.xlu1 %v1322_v39, %s2509_s28  ;;  %s2435_s28 = scalar_lea.hbm %s2434_s22, 8 }
 0x5e3   : > { %1584 = vperm.xlu2 %2142, %v1581_v50   ;;  %p2436_p0 = scmp.ne.s32.totalorder %s2434_s22, %s2435_s28  ;;  %p2441_p4 = scmp.lt.s32.totalorder %s2439_s25, %s2435_s28 }
 0x5e5   : > { %p2437_p1 = pnand %p2436_p0, %p2613_p5  ;;  %p2442_p7 = por %p2441_p4, %p2440_p3 }
 0x5e7   : > { %p2438_p2 = pneg %p2437_p1 }
 0x5e9   : > { %p2443_p8 = pnand %p2442_p7, %p2438_p2 }
 0x605   : > { %v2281_v41 = vpop.permute.xlu2 %2280 }
 0x606   : > { %v2282_v33 = vunpack.i.l.bf16 %v2281_v41  ;;  %v2283_v10 = vunpack.i.h.bf16 %v2281_v41 }
 0x608   : > { %v1710_v5 = vsel %vm588_vm11, %v2282_v33, %v2257_v23 }
 0x60d   : > { %v2296_v28 = vpop.permute.xlu2 %2295 }
 0x60e   : > { %v2297_v15 = vunpack.i.l.bf16 %v2296_v28  ;;  %v2298_v8 = vunpack.i.h.bf16 %v2296_v28 }
 0x60f   : > { %v1685_v0 = vpop.permute.xlu1 %1684 }
 0x610   : > { %v1683_v3 = vpop.permute.xlu0 %1682  ;;  %v1706_v29 = vsel %vm588_vm11, %v2297_v15, %v2283_v10 }
 0x611   : > { %v1713_v46 = vsel %vm588_vm11, %v1683_v3, %v1685_v0 }
 0x612   : > { %1920 = vmatpush.msk.msra.mxu3 %vm651_vm6, %v1713_v46 }
 0x614   : > { %1771 = vmatpush.msra.mxu3 %v1711_v25 }
 0x615   : > { %v2306_v63 = vpop.permute.xlu2 %2305 }
 0x616   : > { %v2307_v30 = vunpack.i.l.bf16 %v2306_v63  ;;  %v2308_v24 = vunpack.i.h.bf16 %v2306_v63 }
 0x618   : > { %v1681_v14 = vpop.permute.xlu0 %1680  ;;  %v1702_v52 = vsel %vm588_vm11, %v2307_v30, %v2298_v8 }
 0x619   : > { %v1712_v54 = vsel %vm588_vm11, %v1681_v14, %v1683_v3 }
 0x61a   : > { %1918 = vmatpush.msk.msra.mxu2 %vm651_vm6, %v1712_v54 }
 0x61c   : > { %1751 = vmatpush.msra.mxu2 %v1710_v5 }
 0x624   : > { %v2261_v36 = vpop.permute.xlu1 %2260 }
 0x625   : > { %v2263_v16 = vunpack.i.h.bf16 %v2261_v36  ;;  %v2262_v26 = vunpack.i.l.bf16 %v2261_v36  ;;  %v2326_v19 = vpop.permute.xlu2 %2325 }
 0x626   : > { %v2327_v58 = vunpack.i.l.bf16 %v2326_v19  ;;  %v2328_v39 = vunpack.i.h.bf16 %v2326_v19 }
 0x627   : > { %v1705_v37 = vsel %vm588_vm11, %v2262_v26, %v2263_v16 }
 0x628   : > { %v1698_v32 = vsel %vm588_vm11, %v2327_v58, %v2308_v24 }
 0x62b   : > { %v3553_v4 = vpop.permute.xlu0 %2270 }
 0x62c   : > { %v3555_v22 = vpop.permute.xlu1 %2265  ;;  %v2273_v3 = vunpack.i.h.bf16 %v3553_v4  ;;  %v2272_v33 = vunpack.i.l.bf16 %v3553_v4 }
 0x62d   : > { %v2336_v47 = vpop.permute.xlu2 %2335  ;;  %v2268_v59 = vunpack.i.h.bf16 %v3555_v22  ;;  %v2267_v2 = vunpack.i.l.bf16 %v3555_v22 }
 0x62e   : > { %v2337_v50 = vunpack.i.l.bf16 %v2336_v47  ;;  %v2338_v46 = vunpack.i.h.bf16 %v2336_v47 }
 0x62f   : > { %v1693_v14 = vsel %vm588_vm11, %v2267_v2, %v2268_v59  ;;  %v1692_v22 = vsel %vm588_vm11, %v2273_v3, %v2267_v2 }
 0x630   : > { %v1694_v28 = vsel %vm588_vm11, %v2337_v50, %v2328_v39  ;;  %v1691_v63 = vsel %vm588_vm11, %v2338_v46, %v2272_v33 }
 0x633   : > { %v2286_v53 = vpop.permute.xlu0 %2285 }
 0x634   : > { %v2288_v44 = vunpack.i.h.bf16 %v2286_v53  ;;  %v2276_v7 = vpop.permute.xlu1 %2275  ;;  %v2287_v12 = vunpack.i.l.bf16 %v2286_v53 }
 0x635   : > { %v2278_v45 = vunpack.i.h.bf16 %v2276_v7  ;;  %v2277_v17 = vunpack.i.l.bf16 %v2276_v7  ;;  %v2341_v0 = vpop.permute.xlu2 %2340 }
 0x636   : > { %v1707_v21 = vsel %vm588_vm11, %v2283_v10, %v2287_v12  ;;  %v2342_v54 = vunpack.i.l.bf16 %v2341_v0  ;;  %v2343_v53 = vunpack.i.h.bf16 %v2341_v0 }
 0x637   : > { %v1708_v1 = vsel %vm588_vm11, %v2288_v44, %v2277_v17  ;;  %v1709_v38 = vsel %vm588_vm11, %v2277_v17, %v2278_v45  ;;  %v1580_v17 = vld [vmem:[%s3629_s7] sm:$0xf] }
 0x638   : > { %1752 = vmatpush.msra.mxu2 %v1708_v1  ;;  %1772 = vmatpush.msra.mxu3 %v1709_v38  ;;  %v1690_v15 = vsel %vm588_vm11, %v2342_v54, %v2338_v46 }
 0x63a   : > { %1753 = vmatpush.msra.mxu2 %v1706_v29  ;;  %1773 = vmatpush.msra.mxu3 %v1707_v21 }
 0x63b   : > { %v2291_v56 = vpop.permute.xlu0 %2290 }
 0x63c   : > { %v2293_v49 = vunpack.i.h.bf16 %v2291_v56  ;;  %v2292_v20 = vunpack.i.l.bf16 %v2291_v56  ;;  %v2301_v57 = vpop.permute.xlu1 %2300  ;;  %1774 = vmatpush.msra.mxu3 %v1705_v37 }
 0x63d   : > { %v2303_v11 = vunpack.i.h.bf16 %v2301_v57  ;;  %v2302_v40 = vunpack.i.l.bf16 %v2301_v57  ;;  %v1585_v1 = vpop.permute.xlu2 %1584 }
 0x63e   : > { %v1704_v27 = vsel %vm588_vm11, %v2293_v49, %v2262_v26  ;;  %v1703_v51 = vsel %vm588_vm11, %v2298_v8, %v2292_v20 }
 0x63f   : > { %1754 = vmatpush.msra.mxu2 %v1704_v27  ;;  %1775 = vmatpush.msra.mxu3 %v1703_v51  ;;  %v1701_v55 = vsel %vm588_vm11, %v2302_v40, %v2303_v11 }
 0x641   : > { %1755 = vmatpush.msra.mxu2 %v1702_v52  ;;  %1776 = vmatpush.msra.mxu3 %v1701_v55 }
 0x643   : > { %v2311_v18 = vpop.permute.xlu0 %2310 }
 0x644   : > { %v2313_v62 = vunpack.i.h.bf16 %v2311_v18  ;;  %v2312_v6 = vunpack.i.l.bf16 %v2311_v18  ;;  %v2316_v61 = vpop.permute.xlu1 %2315 }
 0x645   : > { %v2318_v43 = vunpack.i.h.bf16 %v2316_v61  ;;  %v2317_v13 = vunpack.i.l.bf16 %v2316_v61 }
 0x646   : > { %v1700_v60 = vsel %vm588_vm11, %v2313_v62, %v2302_v40  ;;  %v1699_v35 = vsel %vm588_vm11, %v2308_v24, %v2312_v6 }
 0x647   : > { %1756 = vmatpush.msra.mxu2 %v1700_v60  ;;  %1777 = vmatpush.msra.mxu3 %v1699_v35  ;;  %v1697_v31 = vsel %vm588_vm11, %v2317_v13, %v2318_v43 }
 0x649   : > { %1757 = vmatpush.msra.mxu2 %v1698_v32  ;;  %1778 = vmatpush.msra.mxu3 %v1697_v31 }
 0x64b   : > { %v2331_v48 = vpop.permute.xlu0 %2330 }
 0x64c   : > { %v2333_v34 = vunpack.i.h.bf16 %v2331_v48  ;;  %v2332_v42 = vunpack.i.l.bf16 %v2331_v48  ;;  %v2321_v23 = vpop.permute.xlu1 %2320 }
 0x64d   : > { %v2323_v5 = vunpack.i.h.bf16 %v2321_v23  ;;  %v2322_v36 = vunpack.i.l.bf16 %v2321_v23 }
 0x64e   : > { %v1696_v25 = vsel %vm588_vm11, %v2333_v34, %v2317_v13  ;;  %v1695_v41 = vsel %vm588_vm11, %v2328_v39, %v2332_v42 }
 0x64f   : > { %1758 = vmatpush.msra.mxu2 %v1696_v25  ;;  %1779 = vmatpush.msra.mxu3 %v1695_v41  ;;  %v1689_v12 = vsel %vm588_vm11, %v2322_v36, %v2323_v5 }
 0x651   : > { %1759 = vmatpush.msra.mxu2 %v1694_v28  ;;  %1780 = vmatpush.msra.mxu3 %v1693_v14 }
 0x653   : > { %v2346_v44 = vpop.permute.xlu0 %2345  ;;  %1760 = vmatpush.msra.mxu2 %v1692_v22  ;;  %1781 = vmatpush.msra.mxu3 %v1691_v63 }
 0x654   : > { %v2348_v4 = vunpack.i.h.bf16 %v2346_v44  ;;  %v2347_v7 = vunpack.i.l.bf16 %v2346_v44  ;;  %v1603_v45 = vpop.permute.xlu1 %1602 }
 0x655   : > { %1761 = vmatpush.msra.mxu2 %v1690_v15  ;;  %1782 = vmatpush.msra.mxu3 %v1689_v12  ;;  %v1686_v26 = vsel %vm588_vm11, %v1603_v45, %v2343_v53 }
 0x656   : > { %v1688_v10 = vsel %vm588_vm11, %v2348_v4, %v2322_v36  ;;  %v1687_v16 = vsel %vm588_vm11, %v2343_v53, %v2347_v7 }
 0x657   : > { %1762 = vmatpush.msra.mxu2 %v1688_v10  ;;  %1783 = vmatpush.msra.mxu3 %v1687_v16 }
 0x658   : > { %1921 = vmatmul.msk.f32.vlgmr.msra.gmra.mxu3 %vm1740_vm4, %v1580_v17 }
 0x659   : > { %1763 = vmatpush.msra.mxu2 %v1686_v26 }
 0x65a   : > { %1919 = vmatmul.msk.f32.vlgmr.msra.gmra.mxu2 %vm1740_vm4, %v1580_v17 }
 0x6db   : > { %v1785_v38 = vpop.f32.mrf.mxu3 }
 0x6dc   : > { %v1786_v19 = vadd.f32 %v1785_v38, %v1585_v1 }
 0x6dd   : > { %v1765_v29 = vpop.f32.mrf.mxu2 }
 0x6de   : > { %v1790_v21 = vrot.slane %v1786_v19, 4  ;;  %v1766_v56 = vadd.f32 %v1765_v29, %v1585_v1 }
 0x6e0   : > { %v1791_v37 = vsel %vm651_vm6, %v1766_v56, %v1790_v21 }
 0x6e1   : > { %v1793_v8 = vadd.f32 %v1791_v37, %v2661_v9 }
 0x6e3   : > { %1794 = vst [vmem:[%s359_s24] sm:$0xff] %v1793_v8 }
 0x6e4   : > { %2446 = shalt.err (!%p2443_p8)
}
 0x6e5   : > { %1937 = dma.vmem_to_hbm [thread:$0]  (%p2613_p5), %s1810_s27, 128, %s1812_s29, %s1796_s13  }
 0x6e6 PF: > { %p1954_p9 = scmp.ge.s32.totalorder %s2489_s12, 2  ;;  %s1823_s23 = sand.u32 1, %s2477_s30  }
 0x6e7   : > { %s1824_s16 = scalar_lea.sflag [#allocation4], %s1823_s23 }
 0x6e8   : > { %p1947_p10 = pnand %p1954_p9, %p2617_p6 }
 0x6ea   : > { %p1948_p11 = pneg %p1947_p10 }
 0x6ec   : > { %2472 = dma.done.wait (%p1948_p11), %s1824_s16, 128  }
 0x6ed   : > { %2474 = vsyncadd (%p1948_p11), %s1824_s16, 4294967168  ;;  %p21_p12 = scmp.ge.s32.totalorder %s2600_s15, 4   ;;  %s3654_s30 = smov %s2481_s10 }
 0x6ee   : > { %s3655_s10 = smov %s2485_s11  ;;  %s3656_s11 = smov %s2611_s18 }
 0x6ef   : > { %s3657_s12 = smov %s2600_s15  ;;  %23 = sbr.rel (!%p21_p12) target bundleno = 5 (0x5), region = 100 }
 0x6f4   :  { %1830 = vsyncpa [#allocation3], 1 }
 0x6f5   :  { %1832 = vsyncpa [#allocation3 + $0x1], 1 }
 0x6f6   :  { %1833 = vsyncpa [#allocation6], 1 }
 0x6f7   :  { %1834 = vsyncpa [#allocation4], 1 }
 0x6f8   :  { %1836 = vsyncpa [#allocation4 + $0x1], 1 }

</bundles_post_ra>
